<compile_context>
chip_gen: v7x
topology: tpu7x:2x2x1
jax: 0.10.0
libtpu: 0.0.40
codegen_flags: <defaults>
</compile_context>

<pallas_src>
import functools

import jax
import jax.numpy as jnp
from jax.experimental import pallas as pl
from jax.experimental.pallas import tpu as pltpu

LEAKY_SLOPE = 0.01  # torch.nn.LeakyReLU default negative_slope
BN_EPS = 1e-5       # torch.nn.BatchNorm2d default eps


# ----------------------------------------------------------------------------
# Fused kernel: whole CNN forward for one batch element, activations in VMEM.
# ----------------------------------------------------------------------------
def _cnn_fused_kernel(x_ref, w1_ref, bn1s_ref, bn1b_ref, bn2s_ref, bn2b_ref,
                      wblk_ref, blks_ref, blkb_ref,
                      o_ref, xpad_in_ref, xpad_blk_ref,
                      *, ksize, stride, n_blocks, matmul_dtype):
    _, H, W, Cin = x_ref.shape            # (1, H, W, Cin) NHWC tile for this batch item
    _, Cout, M = o_ref.shape              # (1, Cout, Ho*Wo)  lane-dense output tile
    Ho = xpad_blk_ref.shape[0] - 2
    Wo = xpad_blk_ref.shape[1] - 2

    def lrelu(v):
        return jnp.where(v > 0, v, LEAKY_SLOPE * v)

    def conv_im2col(xp_ref, w2d, k, s, cin):
        """Single im2col matmul: lhs (Ho*Wo, k*k*cin) @ w2d (k*k*cin, Cout) -> f32."""
        cols = []
        for i in range(k):
            for j in range(k):
                if s == 1:
                    patch = xp_ref[pl.ds(i, Ho), pl.ds(j, Wo), :]
                else:
                    patch = xp_ref[pl.ds(i, Ho, s), pl.ds(j, Wo, s), :]
                cols.append(patch.reshape(Ho * Wo, cin))       # layout-preserving collapse
        lhs = jnp.concatenate(cols, axis=-1).astype(matmul_dtype)   # (Ho*Wo, k*k*cin)
        return jnp.dot(lhs, w2d.astype(matmul_dtype),
                       preferred_element_type=jnp.float32)          # (Ho*Wo, Cout) f32

    # ---- fused BN1 + LeakyReLU on the loaded tile (no separate HBM pass) ----
    x = x_ref[0].astype(jnp.float32)                     # (H, W, Cin)
    a = lrelu(x * bn1s_ref[...] + bn1b_ref[...])         # bn params are (1, 1, Cin)

    # ---- zero-pad into VMEM scratch (replaces wrapper-side jnp.pad) ----
    xpad_in_ref[...] = jnp.zeros_like(xpad_in_ref)
    xpad_in_ref[1:1 + H, 1:1 + W, :] = a

    # ---- cnn_1: stride-2 conv as one im2col matmul, then BN2 + LeakyReLU ----
    acc = conv_im2col(xpad_in_ref, w1_ref[...], ksize, stride, Cin)
    act = lrelu(acc * bn2s_ref[...] + bn2b_ref[...])     # (Ho*Wo, Cout) f32, stays in VMEM

    # ---- inception SimpleBlocks: activation never leaves VMEM ----
    if n_blocks > 0:
        xpad_blk_ref[...] = jnp.zeros_like(xpad_blk_ref)   # border stays zero for all blocks
        for b in range(n_blocks):                          # static, fully unrolled
            xpad_blk_ref[1:1 + Ho, 1:1 + Wo, :] = act.reshape(Ho, Wo, Cout)
            acc = conv_im2col(xpad_blk_ref, wblk_ref[b], 3, 1, Cout)
            act = lrelu(acc * blks_ref[b] + blkb_ref[b])   # block bn params are (1, Cout)

    # ---- lane-dense store: (Cout, Ho*Wo) with the spatial axis on lanes ----
    o_ref[0] = act.T.astype(o_ref.dtype)


# ----------------------------------------------------------------------------
# Wrapper: NCHW in / NCHW out, one pallas_call for the whole network.
# ----------------------------------------------------------------------------
def cnn_forward(x_nchw, params, *, kernel_size=3, matmul_dtype=jnp.bfloat16):
    B, Cin, H, W = x_nchw.shape
    w1 = params["w1"]                                   # (k*k*Cin, Cout) im2col layout
    Cout = w1.shape[1]
    ksize = kernel_size
    Ho = (H + 2 - ksize) // 2 + 1                       # stride 2, padding 1
    Wo = (W + 2 - ksize) // 2 + 1
    M = Ho * Wo

    blocks = params["blocks"]
    n_blocks = len(blocks)
    if n_blocks:
        wblk = jnp.stack([b["w"] for b in blocks])        # (N, 9*Cout, Cout)
        sblk = jnp.stack([b["bn_scale"] for b in blocks])  # (N, 1, Cout)
        bblk = jnp.stack([b["bn_bias"] for b in blocks])   # (N, 1, Cout)
    else:  # dummy (unused) operands so the pallas_call signature is static
        wblk = jnp.zeros((1, 9 * Cout, Cout), jnp.float32)
        sblk = jnp.zeros((1, 1, Cout), jnp.float32)
        bblk = jnp.zeros((1, 1, Cout), jnp.float32)
    Nb = wblk.shape[0]

    x_nhwc = jnp.transpose(x_nchw, (0, 2, 3, 1))        # tiny layout op on the input only

    kernel = functools.partial(_cnn_fused_kernel, ksize=ksize, stride=2,
                               n_blocks=n_blocks, matmul_dtype=matmul_dtype)

    out = pl.pallas_call(
        kernel,
        out_shape=jax.ShapeDtypeStruct((B, Cout, M), jnp.float32),
        grid=(B,),
        in_specs=[
            pl.BlockSpec((1, H, W, Cin), lambda b: (b, 0, 0, 0)),          # x (per batch)
            pl.BlockSpec((ksize * ksize * Cin, Cout), lambda b: (0, 0)),   # w1
            pl.BlockSpec((1, 1, Cin), lambda b: (0, 0, 0)),                # bn1 scale
            pl.BlockSpec((1, 1, Cin), lambda b: (0, 0, 0)),                # bn1 bias
            pl.BlockSpec((1, Cout), lambda b: (0, 0)),                     # bn2 scale
            pl.BlockSpec((1, Cout), lambda b: (0, 0)),                     # bn2 bias
            pl.BlockSpec((Nb, 9 * Cout, Cout), lambda b: (0, 0, 0)),       # block weights
            pl.BlockSpec((Nb, 1, Cout), lambda b: (0, 0, 0)),              # block bn scale
            pl.BlockSpec((Nb, 1, Cout), lambda b: (0, 0, 0)),              # block bn bias
        ],
        out_specs=pl.BlockSpec((1, Cout, M), lambda b: (b, 0, 0)),
        scratch_shapes=[
            pltpu.VMEM((H + 2, W + 2, Cin), jnp.float32),    # padded input activation
            pltpu.VMEM((Ho + 2, Wo + 2, Cout), jnp.float32), # padded block activation
        ],
        compiler_params=pltpu.CompilerParams(
            dimension_semantics=("parallel",),               # megacore / 2-TC on v7x
            vmem_limit_bytes=32 * 1024 * 1024,               # safe on v5e/v6e/v7x
        ),
    )(x_nhwc, w1, params["bn1_scale"], params["bn1_bias"],
      params["bn2_scale"], params["bn2_bias"], wblk, sblk, bblk)

    return out.reshape(B, Cout, Ho, Wo)                  # free reshape, already channel-major


# ----------------------------------------------------------------------------
# Parameter construction (deterministic, matches nn.Module shapes; BN folded)
# ----------------------------------------------------------------------------
def make_bn_params(key, c, shape):
    k1, k2, k3, k4 = jax.random.split(key, 4)
    gamma = 1.0 + 0.1 * jax.random.normal(k1, (c,), jnp.float32)
    beta = 0.1 * jax.random.normal(k2, (c,), jnp.float32)
    mean = 0.1 * jax.random.normal(k3, (c,), jnp.float32)
    var = 1.0 + 0.1 * jax.random.uniform(k4, (c,), jnp.float32)
    scale = gamma / jnp.sqrt(var + BN_EPS)
    bias = beta - mean * scale
    return scale.reshape(shape), bias.reshape(shape)


def make_conv_weight(key, cin, cout, k):
    # PyTorch layout (cout, cin, kh, kw) -> HWIO -> im2col 2D layout (kh*kw*cin, cout)
    w = jax.random.normal(key, (cout, cin, k, k), jnp.float32) / ((cin * k * k) ** 0.5)
    return jnp.transpose(w, (2, 3, 1, 0)).reshape(k * k * cin, cout)


def init_cnn_params(key, input_channel, out_channel, kernel_size, num_inception_block):
    keys = jax.random.split(key, 3 + 2 * max(num_inception_block, 1))
    params = {}
    params["bn1_scale"], params["bn1_bias"] = make_bn_params(
        keys[0], input_channel, (1, 1, input_channel))
    params["w1"] = make_conv_weight(keys[1], input_channel, out_channel, kernel_size)
    params["bn2_scale"], params["bn2_bias"] = make_bn_params(
        keys[2], out_channel, (1, out_channel))
    blocks = []
    for b in range(num_inception_block):
        w = make_conv_weight(keys[3 + 2 * b], out_channel, out_channel, 3)
        s, bb = make_bn_params(keys[4 + 2 * b], out_channel, (1, out_channel))
        blocks.append({"w": w, "bn_scale": s, "bn_bias": bb})
    params["blocks"] = blocks
    return params


# ----------------------------------------------------------------------------
# Pure-JAX reference (same folded-BN eval semantics) for a correctness check.
# ----------------------------------------------------------------------------
def _reference_forward(x_nchw, params, ksize):
    def lrelu(v):
        return jnp.where(v > 0, v, LEAKY_SLOPE * v)

    def conv(x, w2d, k, cin, cout, stride):
        w = w2d.reshape(k, k, cin, cout)  # HWIO
        return jax.lax.conv_general_dilated(
            x, w, window_strides=(stride, stride), padding=((1, 1), (1, 1)),
            dimension_numbers=("NHWC", "HWIO", "NHWC"),
            precision=jax.lax.Precision.HIGHEST)

    x = jnp.transpose(x_nchw, (0, 2, 3, 1)).astype(jnp.float32)
    Cin = x.shape[-1]
    Cout = params["w1"].shape[1]
    x = lrelu(x * params["bn1_scale"].reshape(1, 1, 1, -1)
              + params["bn1_bias"].reshape(1, 1, 1, -1))
    x = conv(x, params["w1"], ksize, Cin, Cout, 2)
    x = lrelu(x * params["bn2_scale"].reshape(1, 1, 1, -1)
              + params["bn2_bias"].reshape(1, 1, 1, -1))
    for blk in params["blocks"]:
        x = conv(x, blk["w"], 3, Cout, Cout, 1)
        x = lrelu(x * blk["bn_scale"].reshape(1, 1, 1, -1)
                  + blk["bn_bias"].reshape(1, 1, 1, -1))
    return jnp.transpose(x, (0, 3, 1, 2))


# ----------------------------------------------------------------------------
if __name__ == "__main__":
    key = jax.random.PRNGKey(0)
    k_x, k_p = jax.random.split(key)

    # Small shapes consistent with CNN(input_channel=4, out_channel=8, kernel_size=3,
    # padding=1, dropout=0.1, num_inception_block=2)
    B, C_in, H, W = 2, 4, 16, 16
    C_out, K, N_BLOCKS = 8, 3, 2

    x = jax.random.normal(k_x, (B, C_in, H, W), jnp.float32)
    params = init_cnn_params(k_p, C_in, C_out, K, N_BLOCKS)

    out = jax.block_until_ready(cnn_forward(x, params, kernel_size=K))          # bf16 MXU
    out_f32 = jax.block_until_ready(
        cnn_forward(x, params, kernel_size=K, matmul_dtype=jnp.float32))        # f32 MXU
    ref = jax.block_until_ready(_reference_forward(x, params, K))

    expected_shape = (B, C_out, (H + 2 - K) // 2 + 1, (W + 2 - K) // 2 + 1)
    assert out.shape == expected_shape, (out.shape, expected_shape)
    assert bool(jnp.all(jnp.isfinite(out)))
    assert bool(jnp.allclose(out_f32, ref, atol=2e-2, rtol=2e-2)), "f32 path mismatch"
    assert bool(jnp.allclose(out, ref, atol=1.5e-1, rtol=5e-2)), "bf16 path mismatch"
    print("KERNEL_OK")
</pallas_src>

<mosaic_0001>
module attributes {stable_mosaic.version = 11 : i64} {
  func.func @_cnn_fused_kernel(%arg0: i32, %arg1: memref<1x16x16x4xf32, #tpu.memory_space<vmem>>, %arg2: memref<36x8xf32, #tpu.memory_space<vmem>>, %arg3: memref<1x1x4xf32, #tpu.memory_space<vmem>>, %arg4: memref<1x1x4xf32, #tpu.memory_space<vmem>>, %arg5: memref<1x8xf32, #tpu.memory_space<vmem>>, %arg6: memref<1x8xf32, #tpu.memory_space<vmem>>, %arg7: memref<2x72x8xf32, #tpu.memory_space<vmem>>, %arg8: memref<2x1x8xf32, #tpu.memory_space<vmem>>, %arg9: memref<2x1x8xf32, #tpu.memory_space<vmem>>, %arg10: memref<1x8x64xf32, #tpu.memory_space<vmem>>, %arg11: memref<18x18x4xf32, #tpu.memory_space<vmem>>, %arg12: memref<10x10x8xf32, #tpu.memory_space<vmem>>) attributes {dimension_semantics = [#tpu.dimension_semantics<parallel>], iteration_bounds = array<i64: 2>, scalar_prefetch = 0 : i64, scratch_operands = 2 : i64, tpu.core_type = #tpu.core_type<tc>, window_params = [{transform_indices = @transform_0, window_bounds = array<i64: 1, 16, 16, 4>}, {pipeline_mode = #tpu.pipeline_mode<synchronous>, transform_indices = @transform_1, window_bounds = array<i64: 36, 8>}, {pipeline_mode = #tpu.pipeline_mode<synchronous>, transform_indices = @transform_2, window_bounds = array<i64: 1, 1, 4>}, {pipeline_mode = #tpu.pipeline_mode<synchronous>, transform_indices = @transform_3, window_bounds = array<i64: 1, 1, 4>}, {pipeline_mode = #tpu.pipeline_mode<synchronous>, transform_indices = @transform_4, window_bounds = array<i64: 1, 8>}, {pipeline_mode = #tpu.pipeline_mode<synchronous>, transform_indices = @transform_5, window_bounds = array<i64: 1, 8>}, {pipeline_mode = #tpu.pipeline_mode<synchronous>, transform_indices = @transform_6, window_bounds = array<i64: 2, 72, 8>}, {pipeline_mode = #tpu.pipeline_mode<synchronous>, transform_indices = @transform_7, window_bounds = array<i64: 2, 1, 8>}, {pipeline_mode = #tpu.pipeline_mode<synchronous>, transform_indices = @transform_8, window_bounds = array<i64: 2, 1, 8>}, {transform_indices = @transform_9, window_bounds = array<i64: 1, 8, 64>}]} {
    %c0 = arith.constant 0 : index
    %c0_0 = arith.constant 0 : index
    %c0_1 = arith.constant 0 : index
    %c0_2 = arith.constant 0 : index
    %0 = vector.load %arg1[%c0, %c0_0, %c0_1, %c0_2] : memref<1x16x16x4xf32, #tpu.memory_space<vmem>>, vector<1x16x16x4xf32>
    %1 = vector.shape_cast %0 : vector<1x16x16x4xf32> to vector<16x16x4xf32>
    %c0_3 = arith.constant 0 : index
    %c0_4 = arith.constant 0 : index
    %c0_5 = arith.constant 0 : index
    %2 = vector.load %arg3[%c0_3, %c0_4, %c0_5] : memref<1x1x4xf32, #tpu.memory_space<vmem>>, vector<1x1x4xf32>
    %3 = vector.broadcast %2 : vector<1x1x4xf32> to vector<16x16x4xf32>
    %4 = arith.mulf %1, %3 : vector<16x16x4xf32>
    %c0_6 = arith.constant 0 : index
    %c0_7 = arith.constant 0 : index
    %c0_8 = arith.constant 0 : index
    %5 = vector.load %arg4[%c0_6, %c0_7, %c0_8] : memref<1x1x4xf32, #tpu.memory_space<vmem>>, vector<1x1x4xf32>
    %6 = vector.broadcast %5 : vector<1x1x4xf32> to vector<16x16x4xf32>
    %7 = arith.addf %4, %6 : vector<16x16x4xf32>
    %cst = arith.constant 0.000000e+00 : f32
    %8 = vector.broadcast %cst : f32 to vector<16x16x4xf32>
    %9 = arith.cmpf ogt, %7, %8 : vector<16x16x4xf32>
    %cst_9 = arith.constant 0.00999999977 : f32
    %10 = vector.broadcast %cst_9 : f32 to vector<16x16x4xf32>
    %11 = arith.mulf %10, %7 : vector<16x16x4xf32>
    %12 = arith.select %9, %7, %11 : vector<16x16x4xi1>, vector<16x16x4xf32>
    %cst_10 = arith.constant 0.000000e+00 : f32
    %13 = vector.broadcast %cst_10 : f32 to vector<18x18x4xf32>
    %c0_11 = arith.constant 0 : index
    %c0_12 = arith.constant 0 : index
    %c0_13 = arith.constant 0 : index
    %14 = vector.load %arg11[%c0_11, %c0_12, %c0_13] : memref<18x18x4xf32, #tpu.memory_space<vmem>>, vector<18x18x4xf32>
    tpu.vector_store %arg11[%c0_11, %c0_12, %c0_13], %13 {strides = array<i32>} : memref<18x18x4xf32, #tpu.memory_space<vmem>>, vector<18x18x4xf32>,
    %c1 = arith.constant 1 : index
    %c1_14 = arith.constant 1 : index
    %c0_15 = arith.constant 0 : index
    %15 = vector.load %arg11[%c1, %c1_14, %c0_15] : memref<18x18x4xf32, #tpu.memory_space<vmem>>, vector<16x16x4xf32>
    tpu.vector_store %arg11[%c1, %c1_14, %c0_15], %12 {strides = array<i32>} : memref<18x18x4xf32, #tpu.memory_space<vmem>>, vector<16x16x4xf32>,
    %c0_16 = arith.constant 0 : index
    %c0_17 = arith.constant 0 : index
    %16 = vector.load %arg2[%c0_16, %c0_17] : memref<36x8xf32, #tpu.memory_space<vmem>>, vector<36x8xf32>
    %c0_18 = arith.constant 0 : index
    %c0_19 = arith.constant 0 : index
    %c0_20 = arith.constant 0 : index
    %17 = tpu.strided_load %arg11[%c0_18, %c0_19, %c0_20] {strides = array<i32: 2, 2, 1>} : memref<18x18x4xf32, #tpu.memory_space<vmem>>, vector<8x8x4xf32>
    %18 = vector.shape_cast %17 : vector<8x8x4xf32> to vector<64x4xf32>
    %c0_21 = arith.constant 0 : index
    %c1_22 = arith.constant 1 : index
    %c0_23 = arith.constant 0 : index
    %19 = tpu.strided_load %arg11[%c0_21, %c1_22, %c0_23] {strides = array<i32: 2, 2, 1>} : memref<18x18x4xf32, #tpu.memory_space<vmem>>, vector<8x8x4xf32>
    %20 = vector.shape_cast %19 : vector<8x8x4xf32> to vector<64x4xf32>
    %c0_24 = arith.constant 0 : index
    %c2 = arith.constant 2 : index
    %c0_25 = arith.constant 0 : index
    %21 = tpu.strided_load %arg11[%c0_24, %c2, %c0_25] {strides = array<i32: 2, 2, 1>} : memref<18x18x4xf32, #tpu.memory_space<vmem>>, vector<8x8x4xf32>
    %22 = vector.shape_cast %21 : vector<8x8x4xf32> to vector<64x4xf32>
    %c1_26 = arith.constant 1 : index
    %c0_27 = arith.constant 0 : index
    %c0_28 = arith.constant 0 : index
    %23 = tpu.strided_load %arg11[%c1_26, %c0_27, %c0_28] {strides = array<i32: 2, 2, 1>} : memref<18x18x4xf32, #tpu.memory_space<vmem>>, vector<8x8x4xf32>
    %24 = vector.shape_cast %23 : vector<8x8x4xf32> to vector<64x4xf32>
    %c1_29 = arith.constant 1 : index
    %c1_30 = arith.constant 1 : index
    %c0_31 = arith.constant 0 : index
    %25 = tpu.strided_load %arg11[%c1_29, %c1_30, %c0_31] {strides = array<i32: 2, 2, 1>} : memref<18x18x4xf32, #tpu.memory_space<vmem>>, vector<8x8x4xf32>
    %26 = vector.shape_cast %25 : vector<8x8x4xf32> to vector<64x4xf32>
    %c1_32 = arith.constant 1 : index
    %c2_33 = arith.constant 2 : index
    %c0_34 = arith.constant 0 : index
    %27 = tpu.strided_load %arg11[%c1_32, %c2_33, %c0_34] {strides = array<i32: 2, 2, 1>} : memref<18x18x4xf32, #tpu.memory_space<vmem>>, vector<8x8x4xf32>
    %28 = vector.shape_cast %27 : vector<8x8x4xf32> to vector<64x4xf32>
    %c2_35 = arith.constant 2 : index
    %c0_36 = arith.constant 0 : index
    %c0_37 = arith.constant 0 : index
    %29 = tpu.strided_load %arg11[%c2_35, %c0_36, %c0_37] {strides = array<i32: 2, 2, 1>} : memref<18x18x4xf32, #tpu.memory_space<vmem>>, vector<8x8x4xf32>
    %30 = vector.shape_cast %29 : vector<8x8x4xf32> to vector<64x4xf32>
    %c2_38 = arith.constant 2 : index
    %c1_39 = arith.constant 1 : index
    %c0_40 = arith.constant 0 : index
    %31 = tpu.strided_load %arg11[%c2_38, %c1_39, %c0_40] {strides = array<i32: 2, 2, 1>} : memref<18x18x4xf32, #tpu.memory_space<vmem>>, vector<8x8x4xf32>
    %32 = vector.shape_cast %31 : vector<8x8x4xf32> to vector<64x4xf32>
    %c2_41 = arith.constant 2 : index
    %c2_42 = arith.constant 2 : index
    %c0_43 = arith.constant 0 : index
    %33 = tpu.strided_load %arg11[%c2_41, %c2_42, %c0_43] {strides = array<i32: 2, 2, 1>} : memref<18x18x4xf32, #tpu.memory_space<vmem>>, vector<8x8x4xf32>
    %34 = vector.shape_cast %33 : vector<8x8x4xf32> to vector<64x4xf32>
    %35 = tpu.concatenate %18, %20, %22, %24, %26, %28, %30, %32, %34 in 1 : vector<64x4xf32>, vector<64x4xf32>, vector<64x4xf32>, vector<64x4xf32>, vector<64x4xf32>, vector<64x4xf32>, vector<64x4xf32>, vector<64x4xf32>, vector<64x4xf32> -> vector<64x36xf32>
    %36 = arith.truncf %35 : vector<64x36xf32> to vector<64x36xbf16>
    %37 = arith.truncf %16 : vector<36x8xf32> to vector<36x8xbf16>
    %cst_44 = arith.constant dense<0.000000e+00> : vector<64x8xf32>
    %38 = tpu.matmul %36, %37, %cst_44 {dimension_numbers = #tpu.dot_dimension_numbers<[1], [0], [0], [1], [0, 0, 1, 1], [], []>} : vector<64x36xbf16>, vector<36x8xbf16>, vector<64x8xf32> -> vector<64x8xf32>
    %c0_45 = arith.constant 0 : index
    %c0_46 = arith.constant 0 : index
    %39 = vector.load %arg5[%c0_45, %c0_46] : memref<1x8xf32, #tpu.memory_space<vmem>>, vector<1x8xf32>
    %40 = vector.broadcast %39 : vector<1x8xf32> to vector<64x8xf32>
    %41 = arith.mulf %38, %40 : vector<64x8xf32>
    %c0_47 = arith.constant 0 : index
    %c0_48 = arith.constant 0 : index
    %42 = vector.load %arg6[%c0_47, %c0_48] : memref<1x8xf32, #tpu.memory_space<vmem>>, vector<1x8xf32>
    %43 = vector.broadcast %42 : vector<1x8xf32> to vector<64x8xf32>
    %44 = arith.addf %41, %43 : vector<64x8xf32>
    %cst_49 = arith.constant 0.000000e+00 : f32
    %45 = vector.broadcast %cst_49 : f32 to vector<64x8xf32>
    %46 = arith.cmpf ogt, %44, %45 : vector<64x8xf32>
    %cst_50 = arith.constant 0.00999999977 : f32
    %47 = vector.broadcast %cst_50 : f32 to vector<64x8xf32>
    %48 = arith.mulf %47, %44 : vector<64x8xf32>
    %49 = arith.select %46, %44, %48 : vector<64x8xi1>, vector<64x8xf32>
    %cst_51 = arith.constant 0.000000e+00 : f32
    %50 = vector.broadcast %cst_51 : f32 to vector<10x10x8xf32>
    %c0_52 = arith.constant 0 : index
    %c0_53 = arith.constant 0 : index
    %c0_54 = arith.constant 0 : index
    %51 = vector.load %arg12[%c0_52, %c0_53, %c0_54] : memref<10x10x8xf32, #tpu.memory_space<vmem>>, vector<10x10x8xf32>
    tpu.vector_store %arg12[%c0_52, %c0_53, %c0_54], %50 {strides = array<i32>} : memref<10x10x8xf32, #tpu.memory_space<vmem>>, vector<10x10x8xf32>,
    %52 = vector.shape_cast %49 : vector<64x8xf32> to vector<8x8x8xf32>
    %c1_55 = arith.constant 1 : index
    %c1_56 = arith.constant 1 : index
    %c0_57 = arith.constant 0 : index
    %53 = vector.load %arg12[%c1_55, %c1_56, %c0_57] : memref<10x10x8xf32, #tpu.memory_space<vmem>>, vector<8x8x8xf32>
    tpu.vector_store %arg12[%c1_55, %c1_56, %c0_57], %52 {strides = array<i32>} : memref<10x10x8xf32, #tpu.memory_space<vmem>>, vector<8x8x8xf32>,
    %c0_58 = arith.constant 0 : index
    %c0_59 = arith.constant 0 : index
    %c0_60 = arith.constant 0 : index
    %54 = vector.load %arg7[%c0_58, %c0_59, %c0_60] : memref<2x72x8xf32, #tpu.memory_space<vmem>>, vector<1x72x8xf32>
    %55 = vector.shape_cast %54 : vector<1x72x8xf32> to vector<72x8xf32>
    %c0_61 = arith.constant 0 : index
    %c0_62 = arith.constant 0 : index
    %c0_63 = arith.constant 0 : index
    %56 = vector.load %arg12[%c0_61, %c0_62, %c0_63] : memref<10x10x8xf32, #tpu.memory_space<vmem>>, vector<8x8x8xf32>
    %57 = vector.shape_cast %56 : vector<8x8x8xf32> to vector<64x8xf32>
    %c0_64 = arith.constant 0 : index
    %c1_65 = arith.constant 1 : index
    %c0_66 = arith.constant 0 : index
    %58 = vector.load %arg12[%c0_64, %c1_65, %c0_66] : memref<10x10x8xf32, #tpu.memory_space<vmem>>, vector<8x8x8xf32>
    %59 = vector.shape_cast %58 : vector<8x8x8xf32> to vector<64x8xf32>
    %c0_67 = arith.constant 0 : index
    %c2_68 = arith.constant 2 : index
    %c0_69 = arith.constant 0 : index
    %60 = vector.load %arg12[%c0_67, %c2_68, %c0_69] : memref<10x10x8xf32, #tpu.memory_space<vmem>>, vector<8x8x8xf32>
    %61 = vector.shape_cast %60 : vector<8x8x8xf32> to vector<64x8xf32>
    %c1_70 = arith.constant 1 : index
    %c0_71 = arith.constant 0 : index
    %c0_72 = arith.constant 0 : index
    %62 = vector.load %arg12[%c1_70, %c0_71, %c0_72] : memref<10x10x8xf32, #tpu.memory_space<vmem>>, vector<8x8x8xf32>
    %63 = vector.shape_cast %62 : vector<8x8x8xf32> to vector<64x8xf32>
    %c1_73 = arith.constant 1 : index
    %c1_74 = arith.constant 1 : index
    %c0_75 = arith.constant 0 : index
    %64 = vector.load %arg12[%c1_73, %c1_74, %c0_75] : memref<10x10x8xf32, #tpu.memory_space<vmem>>, vector<8x8x8xf32>
    %65 = vector.shape_cast %64 : vector<8x8x8xf32> to vector<64x8xf32>
    %c1_76 = arith.constant 1 : index
    %c2_77 = arith.constant 2 : index
    %c0_78 = arith.constant 0 : index
    %66 = vector.load %arg12[%c1_76, %c2_77, %c0_78] : memref<10x10x8xf32, #tpu.memory_space<vmem>>, vector<8x8x8xf32>
    %67 = vector.shape_cast %66 : vector<8x8x8xf32> to vector<64x8xf32>
    %c2_79 = arith.constant 2 : index
    %c0_80 = arith.constant 0 : index
    %c0_81 = arith.constant 0 : index
    %68 = vector.load %arg12[%c2_79, %c0_80, %c0_81] : memref<10x10x8xf32, #tpu.memory_space<vmem>>, vector<8x8x8xf32>
    %69 = vector.shape_cast %68 : vector<8x8x8xf32> to vector<64x8xf32>
    %c2_82 = arith.constant 2 : index
    %c1_83 = arith.constant 1 : index
    %c0_84 = arith.constant 0 : index
    %70 = vector.load %arg12[%c2_82, %c1_83, %c0_84] : memref<10x10x8xf32, #tpu.memory_space<vmem>>, vector<8x8x8xf32>
    %71 = vector.shape_cast %70 : vector<8x8x8xf32> to vector<64x8xf32>
    %c2_85 = arith.constant 2 : index
    %c2_86 = arith.constant 2 : index
    %c0_87 = arith.constant 0 : index
    %72 = vector.load %arg12[%c2_85, %c2_86, %c0_87] : memref<10x10x8xf32, #tpu.memory_space<vmem>>, vector<8x8x8xf32>
    %73 = vector.shape_cast %72 : vector<8x8x8xf32> to vector<64x8xf32>
    %74 = tpu.concatenate %57, %59, %61, %63, %65, %67, %69, %71, %73 in 1 : vector<64x8xf32>, vector<64x8xf32>, vector<64x8xf32>, vector<64x8xf32>, vector<64x8xf32>, vector<64x8xf32>, vector<64x8xf32>, vector<64x8xf32>, vector<64x8xf32> -> vector<64x72xf32>
    %75 = arith.truncf %74 : vector<64x72xf32> to vector<64x72xbf16>
    %76 = arith.truncf %55 : vector<72x8xf32> to vector<72x8xbf16>
    %cst_88 = arith.constant dense<0.000000e+00> : vector<64x8xf32>
    %77 = tpu.matmul %75, %76, %cst_88 {dimension_numbers = #tpu.dot_dimension_numbers<[1], [0], [0], [1], [0, 0, 1, 1], [], []>} : vector<64x72xbf16>, vector<72x8xbf16>, vector<64x8xf32> -> vector<64x8xf32>
    %c0_89 = arith.constant 0 : index
    %c0_90 = arith.constant 0 : index
    %c0_91 = arith.constant 0 : index
    %78 = vector.load %arg8[%c0_89, %c0_90, %c0_91] : memref<2x1x8xf32, #tpu.memory_space<vmem>>, vector<1x1x8xf32>
    %79 = vector.shape_cast %78 : vector<1x1x8xf32> to vector<1x8xf32>
    %80 = vector.broadcast %79 : vector<1x8xf32> to vector<64x8xf32>
    %81 = arith.mulf %77, %80 : vector<64x8xf32>
    %c0_92 = arith.constant 0 : index
    %c0_93 = arith.constant 0 : index
    %c0_94 = arith.constant 0 : index
    %82 = vector.load %arg9[%c0_92, %c0_93, %c0_94] : memref<2x1x8xf32, #tpu.memory_space<vmem>>, vector<1x1x8xf32>
    %83 = vector.shape_cast %82 : vector<1x1x8xf32> to vector<1x8xf32>
    %84 = vector.broadcast %83 : vector<1x8xf32> to vector<64x8xf32>
    %85 = arith.addf %81, %84 : vector<64x8xf32>
    %cst_95 = arith.constant 0.000000e+00 : f32
    %86 = vector.broadcast %cst_95 : f32 to vector<64x8xf32>
    %87 = arith.cmpf ogt, %85, %86 : vector<64x8xf32>
    %cst_96 = arith.constant 0.00999999977 : f32
    %88 = vector.broadcast %cst_96 : f32 to vector<64x8xf32>
    %89 = arith.mulf %88, %85 : vector<64x8xf32>
    %90 = arith.select %87, %85, %89 : vector<64x8xi1>, vector<64x8xf32>
    %91 = vector.shape_cast %90 : vector<64x8xf32> to vector<8x8x8xf32>
    %c1_97 = arith.constant 1 : index
    %c1_98 = arith.constant 1 : index
    %c0_99 = arith.constant 0 : index
    %92 = vector.load %arg12[%c1_97, %c1_98, %c0_99] : memref<10x10x8xf32, #tpu.memory_space<vmem>>, vector<8x8x8xf32>
    tpu.vector_store %arg12[%c1_97, %c1_98, %c0_99], %91 {strides = array<i32>} : memref<10x10x8xf32, #tpu.memory_space<vmem>>, vector<8x8x8xf32>,
    %c1_100 = arith.constant 1 : index
    %c0_101 = arith.constant 0 : index
    %c0_102 = arith.constant 0 : index
    %93 = vector.load %arg7[%c1_100, %c0_101, %c0_102] : memref<2x72x8xf32, #tpu.memory_space<vmem>>, vector<1x72x8xf32>
    %94 = vector.shape_cast %93 : vector<1x72x8xf32> to vector<72x8xf32>
    %c0_103 = arith.constant 0 : index
    %c0_104 = arith.constant 0 : index
    %c0_105 = arith.constant 0 : index
    %95 = vector.load %arg12[%c0_103, %c0_104, %c0_105] : memref<10x10x8xf32, #tpu.memory_space<vmem>>, vector<8x8x8xf32>
    %96 = vector.shape_cast %95 : vector<8x8x8xf32> to vector<64x8xf32>
    %c0_106 = arith.constant 0 : index
    %c1_107 = arith.constant 1 : index
    %c0_108 = arith.constant 0 : index
    %97 = vector.load %arg12[%c0_106, %c1_107, %c0_108] : memref<10x10x8xf32, #tpu.memory_space<vmem>>, vector<8x8x8xf32>
    %98 = vector.shape_cast %97 : vector<8x8x8xf32> to vector<64x8xf32>
    %c0_109 = arith.constant 0 : index
    %c2_110 = arith.constant 2 : index
    %c0_111 = arith.constant 0 : index
    %99 = vector.load %arg12[%c0_109, %c2_110, %c0_111] : memref<10x10x8xf32, #tpu.memory_space<vmem>>, vector<8x8x8xf32>
    %100 = vector.shape_cast %99 : vector<8x8x8xf32> to vector<64x8xf32>
    %c1_112 = arith.constant 1 : index
    %c0_113 = arith.constant 0 : index
    %c0_114 = arith.constant 0 : index
    %101 = vector.load %arg12[%c1_112, %c0_113, %c0_114] : memref<10x10x8xf32, #tpu.memory_space<vmem>>, vector<8x8x8xf32>
    %102 = vector.shape_cast %101 : vector<8x8x8xf32> to vector<64x8xf32>
    %c1_115 = arith.constant 1 : index
    %c1_116 = arith.constant 1 : index
    %c0_117 = arith.constant 0 : index
    %103 = vector.load %arg12[%c1_115, %c1_116, %c0_117] : memref<10x10x8xf32, #tpu.memory_space<vmem>>, vector<8x8x8xf32>
    %104 = vector.shape_cast %103 : vector<8x8x8xf32> to vector<64x8xf32>
    %c1_118 = arith.constant 1 : index
    %c2_119 = arith.constant 2 : index
    %c0_120 = arith.constant 0 : index
    %105 = vector.load %arg12[%c1_118, %c2_119, %c0_120] : memref<10x10x8xf32, #tpu.memory_space<vmem>>, vector<8x8x8xf32>
    %106 = vector.shape_cast %105 : vector<8x8x8xf32> to vector<64x8xf32>
    %c2_121 = arith.constant 2 : index
    %c0_122 = arith.constant 0 : index
    %c0_123 = arith.constant 0 : index
    %107 = vector.load %arg12[%c2_121, %c0_122, %c0_123] : memref<10x10x8xf32, #tpu.memory_space<vmem>>, vector<8x8x8xf32>
    %108 = vector.shape_cast %107 : vector<8x8x8xf32> to vector<64x8xf32>
    %c2_124 = arith.constant 2 : index
    %c1_125 = arith.constant 1 : index
    %c0_126 = arith.constant 0 : index
    %109 = vector.load %arg12[%c2_124, %c1_125, %c0_126] : memref<10x10x8xf32, #tpu.memory_space<vmem>>, vector<8x8x8xf32>
    %110 = vector.shape_cast %109 : vector<8x8x8xf32> to vector<64x8xf32>
    %c2_127 = arith.constant 2 : index
    %c2_128 = arith.constant 2 : index
    %c0_129 = arith.constant 0 : index
    %111 = vector.load %arg12[%c2_127, %c2_128, %c0_129] : memref<10x10x8xf32, #tpu.memory_space<vmem>>, vector<8x8x8xf32>
    %112 = vector.shape_cast %111 : vector<8x8x8xf32> to vector<64x8xf32>
    %113 = tpu.concatenate %96, %98, %100, %102, %104, %106, %108, %110, %112 in 1 : vector<64x8xf32>, vector<64x8xf32>, vector<64x8xf32>, vector<64x8xf32>, vector<64x8xf32>, vector<64x8xf32>, vector<64x8xf32>, vector<64x8xf32>, vector<64x8xf32> -> vector<64x72xf32>
    %114 = arith.truncf %113 : vector<64x72xf32> to vector<64x72xbf16>
    %115 = arith.truncf %94 : vector<72x8xf32> to vector<72x8xbf16>
    %cst_130 = arith.constant dense<0.000000e+00> : vector<64x8xf32>
    %116 = tpu.matmul %114, %115, %cst_130 {dimension_numbers = #tpu.dot_dimension_numbers<[1], [0], [0], [1], [0, 0, 1, 1], [], []>} : vector<64x72xbf16>, vector<72x8xbf16>, vector<64x8xf32> -> vector<64x8xf32>
    %c1_131 = arith.constant 1 : index
    %c0_132 = arith.constant 0 : index
    %c0_133 = arith.constant 0 : index
    %117 = vector.load %arg8[%c1_131, %c0_132, %c0_133] : memref<2x1x8xf32, #tpu.memory_space<vmem>>, vector<1x1x8xf32>
    %118 = vector.shape_cast %117 : vector<1x1x8xf32> to vector<1x8xf32>
    %119 = vector.broadcast %118 : vector<1x8xf32> to vector<64x8xf32>
    %120 = arith.mulf %116, %119 : vector<64x8xf32>
    %c1_134 = arith.constant 1 : index
    %c0_135 = arith.constant 0 : index
    %c0_136 = arith.constant 0 : index
    %121 = vector.load %arg9[%c1_134, %c0_135, %c0_136] : memref<2x1x8xf32, #tpu.memory_space<vmem>>, vector<1x1x8xf32>
    %122 = vector.shape_cast %121 : vector<1x1x8xf32> to vector<1x8xf32>
    %123 = vector.broadcast %122 : vector<1x8xf32> to vector<64x8xf32>
    %124 = arith.addf %120, %123 : vector<64x8xf32>
    %cst_137 = arith.constant 0.000000e+00 : f32
    %125 = vector.broadcast %cst_137 : f32 to vector<64x8xf32>
    %126 = arith.cmpf ogt, %124, %125 : vector<64x8xf32>
    %cst_138 = arith.constant 0.00999999977 : f32
    %127 = vector.broadcast %cst_138 : f32 to vector<64x8xf32>
    %128 = arith.mulf %127, %124 : vector<64x8xf32>
    %129 = arith.select %126, %124, %128 : vector<64x8xi1>, vector<64x8xf32>
    %130 = tpu.transpose %129, [1, 0] : vector<64x8xf32> -> vector<8x64xf32>
    %c0_139 = arith.constant 0 : index
    %c0_140 = arith.constant 0 : index
    %c0_141 = arith.constant 0 : index
    %131 = vector.load %arg10[%c0_139, %c0_140, %c0_141] : memref<1x8x64xf32, #tpu.memory_space<vmem>>, vector<1x8x64xf32>
    %132 = vector.shape_cast %131 : vector<1x8x64xf32> to vector<8x64xf32>
    %133 = vector.shape_cast %130 : vector<8x64xf32> to vector<1x8x64xf32>
    tpu.vector_store %arg10[%c0_139, %c0_140, %c0_141], %133 {strides = array<i32>} : memref<1x8x64xf32, #tpu.memory_space<vmem>>, vector<1x8x64xf32>,
    return
  }
  func.func @transform_0(%arg0: i32) -> (i32, i32, i32, i32) {
    %c0_i32 = arith.constant 0 : i32
    %c0_i32_0 = arith.constant 0 : i32
    %c0_i32_1 = arith.constant 0 : i32
    %c0_i32_2 = arith.constant 0 : i32
    return %arg0, %c0_i32, %c0_i32_0, %c0_i32_1 : i32, i32, i32, i32
  }
  func.func @transform_1(%arg0: i32) -> (i32, i32) {
    %c0_i32 = arith.constant 0 : i32
    %c0_i32_0 = arith.constant 0 : i32
    %c0_i32_1 = arith.constant 0 : i32
    return %c0_i32, %c0_i32_0 : i32, i32
  }
  func.func @transform_2(%arg0: i32) -> (i32, i32, i32) {
    %c0_i32 = arith.constant 0 : i32
    %c0_i32_0 = arith.constant 0 : i32
    %c0_i32_1 = arith.constant 0 : i32
    %c0_i32_2 = arith.constant 0 : i32
    return %c0_i32, %c0_i32_0, %c0_i32_1 : i32, i32, i32
  }
  func.func @transform_3(%arg0: i32) -> (i32, i32, i32) {
    %c0_i32 = arith.constant 0 : i32
    %c0_i32_0 = arith.constant 0 : i32
    %c0_i32_1 = arith.constant 0 : i32
    %c0_i32_2 = arith.constant 0 : i32
    return %c0_i32, %c0_i32_0, %c0_i32_1 : i32, i32, i32
  }
  func.func @transform_4(%arg0: i32) -> (i32, i32) {
    %c0_i32 = arith.constant 0 : i32
    %c0_i32_0 = arith.constant 0 : i32
    %c0_i32_1 = arith.constant 0 : i32
    return %c0_i32, %c0_i32_0 : i32, i32
  }
  func.func @transform_5(%arg0: i32) -> (i32, i32) {
    %c0_i32 = arith.constant 0 : i32
    %c0_i32_0 = arith.constant 0 : i32
    %c0_i32_1 = arith.constant 0 : i32
    return %c0_i32, %c0_i32_0 : i32, i32
  }
  func.func @transform_6(%arg0: i32) -> (i32, i32, i32) {
    %c0_i32 = arith.constant 0 : i32
    %c0_i32_0 = arith.constant 0 : i32
    %c0_i32_1 = arith.constant 0 : i32
    %c0_i32_2 = arith.constant 0 : i32
    return %c0_i32, %c0_i32_0, %c0_i32_1 : i32, i32, i32
  }
  func.func @transform_7(%arg0: i32) -> (i32, i32, i32) {
    %c0_i32 = arith.constant 0 : i32
    %c0_i32_0 = arith.constant 0 : i32
    %c0_i32_1 = arith.constant 0 : i32
    %c0_i32_2 = arith.constant 0 : i32
    return %c0_i32, %c0_i32_0, %c0_i32_1 : i32, i32, i32
  }
  func.func @transform_8(%arg0: i32) -> (i32, i32, i32) {
    %c0_i32 = arith.constant 0 : i32
    %c0_i32_0 = arith.constant 0 : i32
    %c0_i32_1 = arith.constant 0 : i32
    %c0_i32_2 = arith.constant 0 : i32
    return %c0_i32, %c0_i32_0, %c0_i32_1 : i32, i32, i32
  }
  func.func @transform_9(%arg0: i32) -> (i32, i32, i32) {
    %c0_i32 = arith.constant 0 : i32
    %c0_i32_0 = arith.constant 0 : i32
    %c0_i32_1 = arith.constant 0 : i32
    return %arg0, %c0_i32, %c0_i32_0 : i32, i32, i32
  }
}

</mosaic_0001>

<bundles_post_ra>
// kernel: tpu_custom_call.1
= control target key start
LH: loop header
LB: loop body
LE: loop exit
PB: predicated region body
PF: predicated region fallthrough
CT: control target
= control target key end

     0   :  { %14 = vsyncpa [#allocation5], 0  ;;  %s4343_s0 = inlined_call_operand.vmem [shape: f32[2,16,16,4], index: 0, kind: input, shape index: {}]   ;;  %s4344_s1 = inlined_call_operand.vmem [shape: f32[36,8], index: 1, kind: input, shape index: {}]   ;;  %s4345_s2 = inlined_call_operand.vmem [shape: f32[1,1,4], index: 2, kind: input, shape index: {}]   ;;  %s4346_s3 = inlined_call_operand.vmem [shape: f32[1,1,4], index: 3, kind: input, shape index: {}]   ;;  %s4347_s4 = inlined_call_operand.vmem [shape: f32[1,8], index: 4, kind: input, shape index: {}]   ;;  %s4348_s5 = inlined_call_operand.vmem [shape: f32[1,8], index: 5, kind: input, shape index: {}]   ;;  %s4349_s6 = inlined_call_operand.vmem [shape: f32[2,72,8], index: 6, kind: input, shape index: {}]   ;;  %s4350_s7 = inlined_call_operand.vmem [shape: f32[2,1,8], index: 7, kind: input, shape index: {}]   ;;  %s4351_s8 = inlined_call_operand.vmem [shape: f32[2,1,8], index: 8, kind: input, shape index: {}]   ;;  %s4352_s9 = inlined_call_operand.hbm [shape: f32[2,8,64], index: 9, kind: output, shape index: {}]  }
   0x1   :  { %16 = vsyncpa [#allocation5 + $0x1], 0  ;;  %s3313_s30 = smov 0   ;;  %s3315_s10 = smov 0  }
   0x2   :  { %s3317_s11 = smov 0   ;;  %s3319_s12 = smov 0  }
   0x3 LB: > { %s3334_s13 = sadd.s32 4294967295, %s3247_s12   ;;  %s2532_s14 = sadd.s32 4294967294, %s3247_s12   ;;  %s3247_s12 = sphi %s3319_s12, %s4370_s12   ;;  %s3243_s11 = sphi %s3317_s11, %s4369_s11   ;;  %s3239_s10 = sphi %s3315_s10, %s4368_s10   ;;  %s3235_s30 = sphi %s3313_s30, %s4367_s30  }
   0x4   : > { %s3338_s15 = sadd.s32 1, %s3247_s12   ;;  %s223_s16 = sadd.s32 1, %s3243_s11 }
   0x5   : > { %s220_s17 = ssub.s32 %s3247_s12, %s3338_s15  ;;  %p233_p0 = scmp.ne.s32.totalorder %s3243_s11, %s3239_s10 }
   0x6   : > { %p221_p1 = scmp.eq.s32.totalorder %s220_s17, 0  ;;  %p234_p2 = scmp.eq.s32.totalorder %s3334_s13, 1 }
   0x7   : > { %p239_p3 = scmp.ne.s32.totalorder %s3239_s10, %s3235_s30  ;;  %p240_p4 = scmp.eq.s32.totalorder %s2532_s14, 1 }
   0x8   : > { %s3349_s18 = scalar_select %p221_p1, %s3243_s11, %s223_s16  }
   0x9   : > { %p3351_p5 = por %p234_p2, %p233_p0  ;;  %p3355_p6 = por %p240_p4, %p239_p3 }
   0xa   : > { %p2535_p7 = scmp.ge.s32.totalorder %s3247_s12, 1  ;;  %p290_p8 = scmp.lt.s32.totalorder %s3247_s12, 3 }
   0xc   : > { %p291_p9 = pnand %p2535_p7, %p290_p8 }
   0xd   : > { %p326_p10 = scmp.lt.s32.totalorder (!%p291_p9), %s3334_s13, 1  ;;  %vm538_vm0 = vcmask (!%p291_p9), 31744   ;;  %vm541_vm1 = vcmask (!%p291_p9), 25600   ;;  %v3249_v0 = vmov (!%p291_p9), 0.0   ;;  %v3471_v1 = vld [vmem:[%s4345_s2] ss:$0 sm:$0xff] (!%p291_p9) }
   0xe   : > { %294 = sbr.rel (%p291_p9) target bundleno = 1361 (0x551), region = 56  ;;  %539 = vst.msk [vmem:[#allocation2] sm:$0xff] (!%p291_p9), %vm538_vm0, %v3249_v0  ;;  %540 = vst.msk [vmem:[#allocation2 + $0x8] sm:$0xff] (!%p291_p9), %vm538_vm0, %v3249_v0  ;;  %v3481_v2 = vld [vmem:[%s4346_s3] ss:$0 sm:$0xff] (!%p291_p9)  ;;  %s3250_s14 = smov (!%p291_p9), 8  }
   0xf   : > { %542 = vst.msk [vmem:[#allocation2 + $0x10] sm:$0x3] (!%p291_p9), %vm541_vm1, %v3249_v0  ;;  %548 = vst.msk [vmem:[#allocation2 + $0x40] sm:$0x3] (!%p291_p9), %vm541_vm1, %v3249_v0  ;;  %s3251_s16 = smov (!%p291_p9), 4   ;;  %s3252_s17 = smov (!%p291_p9), 12  }
  0x10   : > { %546 = vst.msk [vmem:[#allocation2 + $0x30] sm:$0xff] (!%p291_p9), %vm538_vm0, %v3249_v0  ;;  %547 = vst.msk [vmem:[#allocation2 + $0x38] sm:$0xff] (!%p291_p9), %vm538_vm0, %v3249_v0  ;;  %s4355_s23 = smov (!%p291_p9), 24   ;;  %s4359_s28 = smov (!%p291_p9), 32  }
  0x11   : > { %543 = vst.msk [vmem:[#allocation2 + $0x18] sm:$0xff] (!%p291_p9), %vm538_vm0, %v3249_v0  ;;  %544 = vst.msk [vmem:[#allocation2 + $0x20] sm:$0xff] (!%p291_p9), %vm538_vm0, %v3249_v0  ;;  %s3259_s24 = smov (!%p291_p9), 48   ;;  %s3260_s26 = smov (!%p291_p9), 56  }
  0x12   : > { %545 = vst.msk [vmem:[#allocation2 + $0x28] sm:$0x3] (!%p291_p9), %vm541_vm1, %v3249_v0  ;;  %551 = vst.msk [vmem:[#allocation2 + $0x58] sm:$0x3] (!%p291_p9), %vm541_vm1, %v3249_v0 }
  0x13   : > { %549 = vst.msk [vmem:[#allocation2 + $0x48] sm:$0xff] (!%p291_p9), %vm538_vm0, %v3249_v0  ;;  %550 = vst.msk [vmem:[#allocation2 + $0x50] sm:$0xff] (!%p291_p9), %vm538_vm0, %v3249_v0 }
  0x14   : > { %552 = vst.msk [vmem:[#allocation2 + $0x60] sm:$0xff] (!%p291_p9), %vm538_vm0, %v3249_v0  ;;  %553 = vst.msk [vmem:[#allocation2 + $0x68] sm:$0xff] (!%p291_p9), %vm538_vm0, %v3249_v0 }
  0x15   : > { %s3363_s21 = scalar_select %p326_p10, %s3334_s13, 1  ;;  %554 = vst.msk [vmem:[#allocation2 + $0x70] sm:$0x3] %vm541_vm1, %v3249_v0  ;;  %557 = vst.msk [vmem:[#allocation2 + $0x88] sm:$0x3] %vm541_vm1, %v3249_v0 }
  0x16   : > { %555 = vst.msk [vmem:[#allocation2 + $0x78] sm:$0xff] %vm538_vm0, %v3249_v0  ;;  %556 = vst.msk [vmem:[#allocation2 + $0x80] sm:$0xff] %vm538_vm0, %v3249_v0  ;;  %v664_v55 = vld [vmem:[#allocation2 + $0x2] ss:$2 sm:$0xff]  ;;  %v648_v56 = vld [vmem:[#allocation2 + $0x1] ss:$2 sm:$0xff] }
  0x17   : > { %558 = vst.msk [vmem:[#allocation2 + $0x90] sm:$0xff] %vm538_vm0, %v3249_v0  ;;  %559 = vst.msk [vmem:[#allocation2 + $0x98] sm:$0xff] %vm538_vm0, %v3249_v0  ;;  %s2574_s22 = sshll.u32 %s3363_s21, 8  ;;  %s4353_s21 = smov 16  }
  0x18   : > { %560 = vst.msk [vmem:[#allocation2 + $0xa0] sm:$0x3] %vm541_vm1, %v3249_v0  ;;  %563 = vst.msk [vmem:[#allocation2 + $0xb8] sm:$0x3] %vm541_vm1, %v3249_v0  ;;  %s3476_s27 = scalar_lea.vmem %s4343_s0, %s2574_s22  ;;  %s3254_s22 = smov 20  }
  0x19   : > { %561 = vst.msk [vmem:[#allocation2 + $0xa8] sm:$0xff] %vm538_vm0, %v3249_v0  ;;  %562 = vst.msk [vmem:[#allocation2 + $0xb0] sm:$0xff] %vm538_vm0, %v3249_v0  ;;  %v334_v3 = vld [vmem:[%s3476_s27 + $0x10] sm:$0xff]  ;;  %v335_v4 = vld [vmem:[%s3476_s27 + $0x18] sm:$0xff] }
  0x1a   : > { %564 = vst.msk [vmem:[#allocation2 + $0xc0] sm:$0xff] %vm538_vm0, %v3249_v0  ;;  %565 = vst.msk [vmem:[#allocation2 + $0xc8] sm:$0xff] %vm538_vm0, %v3249_v0  ;;  %v338_v5 = vld [vmem:[%s3476_s27 + $0x30] sm:$0xff]  ;;  %v373_v6 = vmul.f32 %v3471_v1, %v334_v3  ;;  %v374_v7 = vmul.f32 %v3471_v1, %v335_v4  ;;  %v339_v8 = vld [vmem:[%s3476_s27 + $0x38] sm:$0xff] }
  0x1b   : > { %566 = vst.msk [vmem:[#allocation2 + $0xd0] sm:$0x3] %vm541_vm1, %v3249_v0  ;;  %569 = vst.msk [vmem:[#allocation2 + $0xe8] sm:$0x3] %vm541_vm1, %v3249_v0  ;;  %v342_v9 = vld [vmem:[%s3476_s27 + $0x50] sm:$0xff]  ;;  %v343_v10 = vld [vmem:[%s3476_s27 + $0x58] sm:$0xff]  ;;  %v377_v11 = vmul.f32 %v3471_v1, %v338_v5  ;;  %v378_v12 = vmul.f32 %v3471_v1, %v339_v8 }
  0x1c   : > { %567 = vst.msk [vmem:[#allocation2 + $0xd8] sm:$0xff] %vm538_vm0, %v3249_v0  ;;  %568 = vst.msk [vmem:[#allocation2 + $0xe0] sm:$0xff] %vm538_vm0, %v3249_v0  ;;  %v381_v13 = vmul.f32 %v3471_v1, %v342_v9  ;;  %v382_v14 = vmul.f32 %v3471_v1, %v343_v10  ;;  %v340_v15 = vld [vmem:[%s3476_s27 + $0x40] sm:$0xff]  ;;  %v341_v16 = vld [vmem:[%s3476_s27 + $0x48] sm:$0xff]  ;;  %v412_v17 = vadd.f32 %v3481_v2, %v373_v6 }
  0x1d   : > { %570 = vst.msk [vmem:[#allocation2 + $0xf0] sm:$0xff] %vm538_vm0, %v3249_v0  ;;  %571 = vst.msk [vmem:[#allocation2 + $0xf8] sm:$0xff] %vm538_vm0, %v3249_v0  ;;  %v413_v18 = vadd.f32 %v3481_v2, %v374_v7  ;;  %v416_v19 = vadd.f32 %v3481_v2, %v377_v11  ;;  %v379_v20 = vmul.f32 %v3471_v1, %v340_v15  ;;  %v344_v24 = vld [vmem:[%s3476_s27 + $0x60] sm:$0xff]  ;;  %v345_v25 = vld [vmem:[%s3476_s27 + $0x68] sm:$0xff] }
  0x1e   : > { %572 = vst.msk [vmem:[#allocation2 + $0x100] sm:$0x3] %vm541_vm1, %v3249_v0  ;;  %575 = vst.msk [vmem:[#allocation2 + $0x118] sm:$0x3] %vm541_vm1, %v3249_v0  ;;  %v417_v21 = vadd.f32 %v3481_v2, %v378_v12  ;;  %v420_v22 = vadd.f32 %v3481_v2, %v381_v13  ;;  %v421_v23 = vadd.f32 %v3481_v2, %v382_v14  ;;  %vm444_vm2 = vcmp.gt.f32.partialorder %v412_v17, 0.0  ;;  %v332_v41 = vld [vmem:[%s3476_s27] sm:$0xff] }
  0x1f   : > { %573 = vst.msk [vmem:[#allocation2 + $0x108] sm:$0xff] %vm538_vm0, %v3249_v0  ;;  %574 = vst.msk [vmem:[#allocation2 + $0x110] sm:$0xff] %vm538_vm0, %v3249_v0  ;;  %v380_v26 = vmul.f32 %v3471_v1, %v341_v16  ;;  %vm445_vm3 = vcmp.gt.f32.partialorder %v413_v18, 0.0  ;;  %v476_v27 = vmul.f32 0.01, %v412_v17  ;;  %vm448_vm4 = vcmp.gt.f32.partialorder %v416_v19, 0.0 }
  0x20   : > { %576 = vst.msk [vmem:[#allocation2 + $0x120] sm:$0xff] %vm538_vm0, %v3249_v0  ;;  %577 = vst.msk [vmem:[#allocation2 + $0x128] sm:$0xff] %vm538_vm0, %v3249_v0  ;;  %v477_v28 = vmul.f32 0.01, %v413_v18  ;;  %vm449_vm5 = vcmp.gt.f32.partialorder %v417_v21, 0.0  ;;  %vm452_vm6 = vcmp.gt.f32.partialorder %v420_v22, 0.0  ;;  %v383_v35 = vmul.f32 %v3471_v1, %v344_v24 }
  0x21   : > { %578 = vst.msk [vmem:[#allocation2 + $0x130] sm:$0x3] %vm541_vm1, %v3249_v0  ;;  %581 = vst.msk [vmem:[#allocation2 + $0x148] sm:$0x3] %vm541_vm1, %v3249_v0  ;;  %vm453_vm7 = vcmp.gt.f32.partialorder %v421_v23, 0.0  ;;  %v508_v29 = vsel %vm444_vm2, %v412_v17, %v476_v27  ;;  %v384_v36 = vmul.f32 %v3471_v1, %v345_v25  ;;  %v418_v39 = vadd.f32 %v3481_v2, %v379_v20  ;;  %v333_v42 = vld [vmem:[%s3476_s27 + $0x8] sm:$0xff] }
  0x22   : > { %579 = vst.msk [vmem:[#allocation2 + $0x138] sm:$0xff] %vm538_vm0, %v3249_v0  ;;  %580 = vst.msk [vmem:[#allocation2 + $0x140] sm:$0xff] %vm538_vm0, %v3249_v0  ;;  %v509_v30 = vsel %vm445_vm3, %v413_v18, %v477_v28  ;;  %v480_v31 = vmul.f32 0.01, %v416_v19  ;;  %v481_v32 = vmul.f32 0.01, %v417_v21  ;;  %v419_v40 = vadd.f32 %v3481_v2, %v380_v26 }
  0x23   : > { %582 = vst.msk [vmem:[#allocation2 + $0x150] sm:$0xff] %vm538_vm0, %v3249_v0  ;;  %583 = vst.msk [vmem:[#allocation2 + $0x158] sm:$0xff] %vm538_vm0, %v3249_v0  ;;  %v484_v33 = vmul.f32 0.01, %v420_v22  ;;  %v485_v34 = vmul.f32 0.01, %v421_v23  ;;  %v422_v46 = vadd.f32 %v3481_v2, %v383_v35  ;;  %v423_v47 = vadd.f32 %v3481_v2, %v384_v36 }
  0x24   : > { %584 = vst.msk [vmem:[#allocation2 + $0x160] sm:$0x3] %vm541_vm1, %v3249_v0  ;;  %587 = vst.msk [vmem:[#allocation2 + $0x178] sm:$0x3] %vm541_vm1, %v3249_v0  ;;  %v512_v37 = vsel %vm448_vm4, %v416_v19, %v480_v31  ;;  %v513_v38 = vsel %vm449_vm5, %v417_v21, %v481_v32  ;;  %v336_v43 = vld [vmem:[%s3476_s27 + $0x20] sm:$0xff]  ;;  %v337_v48 = vld [vmem:[%s3476_s27 + $0x28] sm:$0xff]  ;;  %v371_v59 = vmul.f32 %v3471_v1, %v332_v41 }
  0x25   : > { %585 = vst.msk [vmem:[#allocation2 + $0x168] sm:$0xff] %vm538_vm0, %v3249_v0  ;;  %586 = vst.msk [vmem:[#allocation2 + $0x170] sm:$0xff] %vm538_vm0, %v3249_v0  ;;  %v516_v44 = vsel %vm452_vm6, %v420_v22, %v484_v33  ;;  %v517_v45 = vsel %vm453_vm7, %v421_v23, %v485_v34  ;;  %v346_v49 = vld [vmem:[%s3476_s27 + $0x70] sm:$0xff]  ;;  %v347_v50 = vld [vmem:[%s3476_s27 + $0x78] sm:$0xff]  ;;  %vm450_vm8 = vcmp.gt.f32.partialorder %v418_v39, 0.0  ;;  %vm451_vm9 = vcmp.gt.f32.partialorder %v419_v40, 0.0 }
  0x26   : > { %588 = vst.msk [vmem:[#allocation2 + $0x180] sm:$0xff] %vm538_vm0, %v3249_v0  ;;  %589 = vst.msk [vmem:[#allocation2 + $0x188] sm:$0xff] %vm538_vm0, %v3249_v0  ;;  %v482_v51 = vmul.f32 0.01, %v418_v39  ;;  %v483_v52 = vmul.f32 0.01, %v419_v40  ;;  %v372_v60 = vmul.f32 %v3471_v1, %v333_v42  ;;  %v375_v63 = vmul.f32 %v3471_v1, %v336_v43 }
  0x27   : > { %590 = vst.msk [vmem:[#allocation2 + $0x190] sm:$0x3] %vm541_vm1, %v3249_v0  ;;  %vm454_vm10 = vcmp.gt.f32.partialorder %v422_v46, 0.0  ;;  %vm455_vm11 = vcmp.gt.f32.partialorder %v423_v47, 0.0  ;;  %v486_v53 = vmul.f32 0.01, %v422_v46  ;;  %v376_v3 = vmul.f32 %v3471_v1, %v337_v48 }
  0x28   : > { %597 = vst.msk [vmem:[#allocation2 + $0x31] sm:$0xff] %vm538_vm0, %v508_v29  ;;  %598 = vst.msk [vmem:[#allocation2 + $0x39] sm:$0xff] %vm538_vm0, %v509_v30  ;;  %v487_v54 = vmul.f32 0.01, %v423_v47  ;;  %v514_v57 = vsel %vm450_vm8, %v418_v39, %v482_v51  ;;  %v515_v58 = vsel %vm451_vm9, %v419_v40, %v483_v52  ;;  %v350_v4 = vld [vmem:[%s3476_s27 + $0x90] sm:$0xff]  ;;  %v410_v7 = vadd.f32 %v3481_v2, %v371_v59  ;;  %v351_v11 = vld [vmem:[%s3476_s27 + $0x98] sm:$0xff] }
  0x29   : > { %601 = vst.msk [vmem:[#allocation2 + $0x61] sm:$0xff] %vm538_vm0, %v512_v37  ;;  %602 = vst.msk [vmem:[#allocation2 + $0x69] sm:$0xff] %vm538_vm0, %v513_v38  ;;  %v518_v61 = vsel %vm454_vm10, %v422_v46, %v486_v53  ;;  %v411_v8 = vadd.f32 %v3481_v2, %v372_v60  ;;  %v385_v9 = vmul.f32 %v3471_v1, %v346_v49  ;;  %v354_v30 = vld [vmem:[%s3476_s27 + $0xb0] sm:$0xff]  ;;  %v355_v36 = vld [vmem:[%s3476_s27 + $0xb8] sm:$0xff] }
  0x2a   : > { %605 = vst.msk [vmem:[#allocation2 + $0x91] sm:$0xff] %vm538_vm0, %v516_v44  ;;  %606 = vst.msk [vmem:[#allocation2 + $0x99] sm:$0xff] %vm538_vm0, %v517_v45  ;;  %v519_v62 = vsel %vm455_vm11, %v423_v47, %v487_v54  ;;  %v386_v10 = vmul.f32 %v3471_v1, %v347_v50  ;;  %v414_v14 = vadd.f32 %v3481_v2, %v375_v63  ;;  %vm442_vm12 = vcmp.gt.f32.partialorder %v410_v7, 0.0  ;;  %v358_v40 = vld [vmem:[%s3476_s27 + $0xd0] sm:$0xff]  ;;  %v359_v41 = vld [vmem:[%s3476_s27 + $0xd8] sm:$0xff] }
  0x2b   : > { %603 = vst.msk [vmem:[#allocation2 + $0x79] sm:$0xff] %vm538_vm0, %v514_v57  ;;  %604 = vst.msk [vmem:[#allocation2 + $0x81] sm:$0xff] %vm538_vm0, %v515_v58  ;;  %v415_v15 = vadd.f32 %v3481_v2, %v376_v3  ;;  %vm443_vm13 = vcmp.gt.f32.partialorder %v411_v8, 0.0  ;;  %v424_v18 = vadd.f32 %v3481_v2, %v385_v9  ;;  %v389_v22 = vmul.f32 %v3471_v1, %v350_v4  ;;  %v356_v47 = vld [vmem:[%s3476_s27 + $0xc0] sm:$0xff]  ;;  %v357_v49 = vld [vmem:[%s3476_s27 + $0xc8] sm:$0xff] }
  0x2c   : > { %607 = vst.msk [vmem:[#allocation2 + $0xa9] sm:$0xff] %vm538_vm0, %v518_v61  ;;  %608 = vst.msk [vmem:[#allocation2 + $0xb1] sm:$0xff] %vm538_vm0, %v519_v62  ;;  %v425_v19 = vadd.f32 %v3481_v2, %v386_v10  ;;  %vm446_vm14 = vcmp.gt.f32.partialorder %v414_v14, 0.0  ;;  %v390_v23 = vmul.f32 %v3471_v1, %v351_v11  ;;  %v474_v26 = vmul.f32 0.01, %v410_v7  ;;  %v360_v50 = vld [vmem:[%s3476_s27 + $0xe0] sm:$0xff] }
  0x2d   : > { %vm447_vm15 = vcmp.gt.f32.partialorder %v415_v15, 0.0  ;;  %v475_v27 = vmul.f32 0.01, %v411_v8  ;;  %v478_v28 = vmul.f32 0.01, %v414_v14  ;;  %v428_v34 = vadd.f32 %v3481_v2, %v389_v22  ;;  %v349_v11 = vld [vmem:[%s3476_s27 + $0x88] sm:$0xff] }
  0x2e   : > { %v479_v29 = vmul.f32 0.01, %v415_v15  ;;  %v506_v32 = vsel %vm442_vm12, %v410_v7, %v474_v26  ;;  %v429_v35 = vadd.f32 %v3481_v2, %v390_v23  ;;  %vm456_vm1 = vcmp.gt.f32.partialorder %v424_v18, 0.0 }
  0x2f   : > { %v666_v5 = vld [vmem:[#allocation2 + $0x32] ss:$2 sm:$0xff]  ;;  %v650_v6 = vld [vmem:[#allocation2 + $0x31] ss:$2 sm:$0xff]  ;;  %v507_v33 = vsel %vm443_vm13, %v411_v8, %v475_v27  ;;  %v510_v38 = vsel %vm446_vm14, %v414_v14, %v478_v28  ;;  %595 = vst.msk [vmem:[#allocation2 + $0x19] sm:$0xff] %vm538_vm0, %v506_v32  ;;  %vm457_vm2 = vcmp.gt.f32.partialorder %v425_v19, 0.0  ;;  %v393_v46 = vmul.f32 %v3471_v1, %v354_v30 }
  0x30   : > { %v2715_v12 = vpack.i.bf16 %v666_v5, %v664_v55  ;;  %v2705_v13 = vpack.i.bf16 %v650_v6, %v648_v56  ;;  %v668_v16 = vld [vmem:[#allocation2 + $0x62] ss:$2 sm:$0xff]  ;;  %v652_v17 = vld [vmem:[#allocation2 + $0x61] ss:$2 sm:$0xff]  ;;  %v511_v39 = vsel %vm447_vm15, %v415_v15, %v479_v29  ;;  %596 = vst.msk [vmem:[#allocation2 + $0x21] sm:$0xff] %vm538_vm0, %v507_v33  ;;  %599 = vst.msk [vmem:[#allocation2 + $0x49] sm:$0xff] %vm538_vm0, %v510_v38 }
  0x31   : > { %v670_v20 = vld [vmem:[#allocation2 + $0x92] ss:$2 sm:$0xff]  ;;  %v654_v21 = vld [vmem:[#allocation2 + $0x91] ss:$2 sm:$0xff]  ;;  %600 = vst.msk [vmem:[#allocation2 + $0x51] sm:$0xff] %vm538_vm0, %v511_v39  ;;  %vm460_vm3 = vcmp.gt.f32.partialorder %v428_v34, 0.0  ;;  %v394_v60 = vmul.f32 %v3471_v1, %v355_v36  ;;  %v397_v61 = vmul.f32 %v3471_v1, %v358_v40  ;;  %v398_v3 = vmul.f32 %v3471_v1, %v359_v41 }
  0x32   : > { %2716 = vrot.lane.b32.xlu1 %v2715_v12, %s3250_s14  ;;  %2706 = vrot.lane.b32.xlu0 %v2705_v13, %s3251_s16  ;;  %v2720_v24 = vpack.i.bf16 %v670_v20, %v668_v16  ;;  %v2710_v25 = vpack.i.bf16 %v654_v21, %v652_v17  ;;  %v683_v31 = vld [vmem:[#allocation2 + $0x78] ss:$2 sm:$0xff]  ;;  %v699_v43 = vld [vmem:[#allocation2 + $0x79] ss:$2 sm:$0xff]  ;;  %v488_v45 = vmul.f32 0.01, %v424_v18  ;;  %v432_v4 = vadd.f32 %v3481_v2, %v393_v46 }
  0x33   : > { %v685_v37 = vld [vmem:[#allocation2 + $0xa8] ss:$2 sm:$0xff]  ;;  %v701_v44 = vld [vmem:[#allocation2 + $0xa9] ss:$2 sm:$0xff]  ;;  %v489_v48 = vmul.f32 0.01, %v425_v19  ;;  %v433_v7 = vadd.f32 %v3481_v2, %v394_v60  ;;  %v436_v8 = vadd.f32 %v3481_v2, %v397_v61  ;;  %v395_v9 = vmul.f32 %v3471_v1, %v356_v47 }
  0x34   : > { %v2730_v42 = vpack.i.bf16 %v685_v37, %v683_v31  ;;  %vm461_vm4 = vcmp.gt.f32.partialorder %v429_v35, 0.0  ;;  %v520_v51 = vsel %vm456_vm1, %v424_v18, %v488_v45  ;;  %v3570_v52 = vld [vmem:[#allocation2 + $0x30] ss:$2 sm:$0xff]  ;;  %v492_v53 = vmul.f32 0.01, %v428_v34  ;;  %v361_v5 = vld [vmem:[%s3476_s27 + $0xe8] sm:$0xff] }
  0x35   : > { %v493_v54 = vmul.f32 0.01, %v429_v35  ;;  %v2740_v55 = vpack.i.bf16 %v701_v44, %v699_v43  ;;  %v715_v56 = vld [vmem:[#allocation2 + $0x7a] ss:$2 sm:$0xff]  ;;  %v717_v57 = vld [vmem:[#allocation2 + $0xaa] ss:$2 sm:$0xff]  ;;  %v521_v58 = vsel %vm457_vm2, %v425_v19, %v489_v48  ;;  %v396_v10 = vmul.f32 %v3471_v1, %v357_v49 }
  0x36   : > { %2721 = vrot.lane.b32.xlu1 %v2720_v24, %s3250_s14  ;;  %2711 = vrot.lane.b32.xlu0 %v2710_v25, %s3251_s16  ;;  %609 = vst.msk [vmem:[#allocation2 + $0xc1] sm:$0xff] %vm538_vm0, %v520_v51  ;;  %v3575_v59 = vld [vmem:[#allocation2 + $0x60] ss:$2 sm:$0xff]  ;;  %610 = vst.msk [vmem:[#allocation2 + $0xc9] sm:$0xff] %vm538_vm0, %v521_v58  ;;  %v524_v62 = vsel %vm460_vm3, %v428_v34, %v492_v53  ;;  %v2750_v14 = vpack.i.bf16 %v717_v57, %v715_v56  ;;  %v731_v21 = vld [vmem:[#allocation2 + $0x90] ss:$2 sm:$0xff] }
  0x37   : > { %v525_v63 = vsel %vm461_vm4, %v429_v35, %v493_v54  ;;  %v348_v6 = vld [vmem:[%s3476_s27 + $0x80] sm:$0xff]  ;;  %613 = vst.msk [vmem:[#allocation2 + $0xf1] sm:$0xff] %vm538_vm0, %v524_v62  ;;  %v2755_v15 = vpack.i.bf16 %v3575_v59, %v3570_v52  ;;  %v437_v16 = vadd.f32 %v3481_v2, %v398_v3  ;;  %v399_v17 = vmul.f32 %v3471_v1, %v360_v50  ;;  %v3605_v30 = vld [vmem:[#allocation2 + $0x91] ss:$2 sm:$0xff]  ;;  %v353_v31 = vld [vmem:[%s3476_s27 + $0xa8] sm:$0xff] }
  0x38   : > { %614 = vst.msk [vmem:[#allocation2 + $0xf9] sm:$0xff] %vm538_vm0, %v525_v63  ;;  %v679_v12 = vld [vmem:[#allocation2 + $0x18] ss:$2 sm:$0xff]  ;;  %v695_v13 = vld [vmem:[#allocation2 + $0x19] ss:$2 sm:$0xff]  ;;  %v400_v22 = vmul.f32 %v3471_v1, %v361_v5  ;;  %v434_v23 = vadd.f32 %v3481_v2, %v395_v9  ;;  %v435_v24 = vadd.f32 %v3481_v2, %v396_v10  ;;  %v387_v25 = vmul.f32 %v3471_v1, %v348_v6  ;;  %v362_v63 = vld [vmem:[%s3476_s27 + $0xf0] sm:$0xff] }
  0x39   : > { %v352_v18 = vld [vmem:[%s3476_s27 + $0xa0] sm:$0xff]  ;;  %v681_v19 = vld [vmem:[#allocation2 + $0x48] ss:$2 sm:$0xff]  ;;  %v697_v20 = vld [vmem:[#allocation2 + $0x49] ss:$2 sm:$0xff]  ;;  %vm464_vm5 = vcmp.gt.f32.partialorder %v432_v4, 0.0  ;;  %v388_v32 = vmul.f32 %v3471_v1, %v349_v11  ;;  %v438_v37 = vadd.f32 %v3481_v2, %v399_v17  ;;  %v392_v44 = vmul.f32 %v3471_v1, %v353_v31 }
  0x3a   : > { %2731 = vrot.lane.b32.xlu1 %v2730_v42, %s3252_s17  ;;  %v2725_v26 = vpack.i.bf16 %v681_v19, %v679_v12  ;;  %v2735_v27 = vpack.i.bf16 %v697_v20, %v695_v13  ;;  %v3603_v28 = vld [vmem:[#allocation2 + $0x1a] ss:$2 sm:$0xff]  ;;  %v713_v29 = vld [vmem:[#allocation2 + $0x4a] ss:$2 sm:$0xff]  ;;  %vm465_vm6 = vcmp.gt.f32.partialorder %v433_v7, 0.0  ;;  %vm468_vm7 = vcmp.gt.f32.partialorder %v436_v8, 0.0 }
  0x3b   : > { %vm469_vm8 = vcmp.gt.f32.partialorder %v437_v16, 0.0  ;;  %v496_v33 = vmul.f32 0.01, %v432_v4  ;;  %v497_v34 = vmul.f32 0.01, %v433_v7  ;;  %v439_v42 = vadd.f32 %v3481_v2, %v400_v22  ;;  %v363_v3 = vld [vmem:[%s3476_s27 + $0xf8] sm:$0xff] }
  0x3c   : > { %2726 = vrot.lane.b32.xlu0 %v2725_v26, %s3252_s17  ;;  %v500_v35 = vmul.f32 0.01, %v436_v8  ;;  %v501_v36 = vmul.f32 0.01, %v437_v16  ;;  %v391_v43 = vmul.f32 %v3471_v1, %v352_v18  ;;  %v426_v49 = vadd.f32 %v3481_v2, %v387_v25  ;;  %v3642_v5 = vld [vmem:[#allocation2 + $0x31] ss:$2 sm:$0xff] }
  0x3d   : > { %v733_v38 = vld [vmem:[#allocation2 + $0xc0] ss:$2 sm:$0xff]  ;;  %v749_v39 = vld [vmem:[#allocation2 + $0xc1] ss:$2 sm:$0xff]  ;;  %v528_v41 = vsel %vm464_vm5, %v432_v4, %v496_v33  ;;  %v529_v47 = vsel %vm465_vm6, %v433_v7, %v497_v34  ;;  %v2745_v50 = vpack.i.bf16 %v713_v29, %v3603_v28  ;;  %vm466_vm9 = vcmp.gt.f32.partialorder %v434_v23, 0.0  ;;  %v629_v10 = vld [vmem:[%s4344_s1 + $0x10] sm:$0xff] }
  0x3e   : > { %2741 = vrot.lane.b32.xlu1 %v2740_v55, %s4353_s21  ;;  %v3612_v40 = vld [vmem:[#allocation2 + $0xc1] ss:$2 sm:$0xff]  ;;  %v2760_v45 = vpack.i.bf16 %v733_v38, %v731_v21  ;;  %v532_v48 = vsel %vm468_vm7, %v436_v8, %v500_v35  ;;  %617 = vst.msk [vmem:[#allocation2 + $0x121] sm:$0xff] %vm538_vm0, %v528_v41  ;;  %v2770_v51 = vpack.i.bf16 %v749_v39, %v3605_v30  ;;  %618 = vst.msk [vmem:[#allocation2 + $0x129] sm:$0xff] %vm538_vm0, %v529_v47  ;;  %v630_v11 = vld [vmem:[%s4344_s1 + $0x18] sm:$0xff]  ;;  %vm1038_vm3 = vcmask 64512  }
  0x3f   : > { %v3618_v46 = vld [vmem:[#allocation2 + $0xf1] ss:$2 sm:$0xff]  ;;  %v533_v54 = vsel %vm469_vm8, %v437_v16, %v501_v36  ;;  %621 = vst.msk [vmem:[#allocation2 + $0x151] sm:$0xff] %vm538_vm0, %v532_v48  ;;  %vm467_vm10 = vcmp.gt.f32.partialorder %v435_v24, 0.0  ;;  %vm470_vm11 = vcmp.gt.f32.partialorder %v438_v37, 0.0  ;;  %vm471_vm12 = vcmp.gt.f32.partialorder %v439_v42, 0.0 }
  0x40   : > { %v2780_v53 = vpack.i.bf16 %v3618_v46, %v3612_v40  ;;  %2736 = vrot.lane.b32.xlu0 %v2735_v27, %s4353_s21  ;;  %622 = vst.msk [vmem:[#allocation2 + $0x159] sm:$0xff] %vm538_vm0, %v533_v54  ;;  %v498_v55 = vmul.f32 0.01, %v434_v23  ;;  %v499_v56 = vmul.f32 0.01, %v435_v24  ;;  %v427_v58 = vadd.f32 %v3481_v2, %v388_v32  ;;  %v627_v4 = vld [vmem:[%s4344_s1] sm:$0xff] }
  0x41   : > { %v502_v57 = vmul.f32 0.01, %v438_v37  ;;  %v503_v60 = vmul.f32 0.01, %v439_v42  ;;  %v430_v61 = vadd.f32 %v3481_v2, %v391_v43  ;;  %v431_v62 = vadd.f32 %v3481_v2, %v392_v44  ;;  %v628_v9 = vld [vmem:[%s4344_s1 + $0x8] sm:$0xff]  ;;  %s3256_s21 = smov 28  }
  0x42   : > { %2751 = vrot.lane.b32.xlu1 %v2750_v14, %s3254_s22  ;;  %vm458_vm13 = vcmp.gt.f32.partialorder %v426_v49, 0.0  ;;  %v530_v6 = vsel %vm466_vm9, %v434_v23, %v498_v55  ;;  %v531_v7 = vsel %vm467_vm10, %v435_v24, %v499_v56  ;;  %vm459_vm14 = vcmp.gt.f32.partialorder %v427_v58, 0.0  ;;  %v745_v12 = vld [vmem:[#allocation2 + $0x61] ss:$2 sm:$0xff]  ;;  %v759_v30 = vld [vmem:[#allocation2 + $0x32] ss:$2 sm:$0xff] }
  0x43   : > { %v534_v8 = vsel %vm470_vm11, %v438_v37, %v502_v57  ;;  %v535_v13 = vsel %vm471_vm12, %v439_v42, %v503_v60  ;;  %619 = vst.msk [vmem:[#allocation2 + $0x139] sm:$0xff] %vm538_vm0, %v530_v6  ;;  %620 = vst.msk [vmem:[#allocation2 + $0x141] sm:$0xff] %vm538_vm0, %v531_v7  ;;  %vm462_vm15 = vcmp.gt.f32.partialorder %v430_v61, 0.0  ;;  %vm463_vm1 = vcmp.gt.f32.partialorder %v431_v62, 0.0  ;;  %v761_v31 = vld [vmem:[#allocation2 + $0x62] ss:$2 sm:$0xff] }
  0x44   : > { %2746 = vrot.lane.b32.xlu0 %v2745_v50, %s3254_s22  ;;  %623 = vst.msk [vmem:[#allocation2 + $0x169] sm:$0xff] %vm538_vm0, %v534_v8  ;;  %v490_v14 = vmul.f32 0.01, %v426_v49  ;;  %624 = vst.msk [vmem:[#allocation2 + $0x171] sm:$0xff] %vm538_vm0, %v535_v13  ;;  %v491_v16 = vmul.f32 0.01, %v427_v58  ;;  %v401_v19 = vmul.f32 %v3471_v1, %v362_v63  ;;  %v402_v22 = vmul.f32 %v3471_v1, %v363_v3 }
  0x45   : > { %v494_v17 = vmul.f32 0.01, %v430_v61  ;;  %v495_v18 = vmul.f32 0.01, %v431_v62  ;;  %v660_v20 = vld [vmem:[#allocation2 + $0x121] ss:$2 sm:$0xff]  ;;  %v1105_v23 = vpack.c.bf16 %v628_v9, %v627_v4  ;;  %v1106_v24 = vpack.c.bf16 %v630_v11, %v629_v10 }
  0x46   : > { %2761 = vrot.lane.b32.xlu1 %v2760_v45, %s4355_s23  ;;  %v522_v21 = vsel %vm458_vm13, %v426_v49, %v490_v14  ;;  %v523_v26 = vsel %vm459_vm14, %v427_v58, %v491_v16  ;;  %v440_v29 = vadd.f32 %v3481_v2, %v401_v19  ;;  %v2765_v1 = vpack.i.bf16 %v745_v12, %v3642_v5  ;;  %v676_v52 = vld [vmem:[#allocation2 + $0x122] ss:$2 sm:$0xff]  ;;  %v763_v37 = vld [vmem:[#allocation2 + $0x92] ss:$2 sm:$0xff]  ;;  %v753_v19 = vld [vmem:[#allocation2 + $0x121] ss:$2 sm:$0xff] }
  0x47   : > { %v662_v25 = vld [vmem:[#allocation2 + $0x151] ss:$2 sm:$0xff]  ;;  %v526_v27 = vsel %vm462_vm15, %v430_v61, %v494_v17  ;;  %v527_v28 = vsel %vm463_vm1, %v431_v62, %v495_v18  ;;  %611 = vst.msk [vmem:[#allocation2 + $0xd9] sm:$0xff] %vm538_vm0, %v522_v21  ;;  %612 = vst.msk [vmem:[#allocation2 + $0xe1] sm:$0xff] %vm538_vm0, %v523_v26  ;;  %v441_v32 = vadd.f32 %v3481_v2, %v402_v22  ;;  %2600 = vmatprep.subr.bf16.mxu0 %v1105_v23  ;;  %v765_v38 = vld [vmem:[#allocation2 + $0xc2] ss:$2 sm:$0xff] }
  0x48   : > { %2756 = vrot.lane.b32.xlu0 %v2755_v15, %s4355_s23  ;;  %615 = vst.msk [vmem:[#allocation2 + $0x109] sm:$0xff] %vm538_vm0, %v526_v27  ;;  %616 = vst.msk [vmem:[#allocation2 + $0x111] sm:$0xff] %vm538_vm0, %v527_v28  ;;  %v2790_v33 = vpack.i.bf16 %v662_v25, %v660_v20  ;;  %vm472_vm2 = vcmp.gt.f32.partialorder %v440_v29, 0.0  ;;  %v504_v59 = vmul.f32 0.01, %v440_v29  ;;  %2601 = vmatpush3.bf16.msra.mxu0 %v1105_v23  ;;  %vm1121_vm5 = vcmask 1041408  }
  0x49   : > { %v678_v15 = vld [vmem:[#allocation2 + $0x152] ss:$2 sm:$0xff]  ;;  %vm473_vm4 = vcmp.gt.f32.partialorder %v441_v32, 0.0  ;;  %v505_v34 = vmul.f32 0.01, %v441_v32  ;;  %1244 = vst.msk [vmem:[#allocation3] sm:$0xff] %vm1038_vm3, %v3249_v0  ;;  %2602 = vmatprep.subr.bf16.mxu0 %v1106_v24  ;;  %v2775_v35 = vpack.i.bf16 %v761_v31, %v759_v30  ;;  %v2785_v44 = vpack.i.bf16 %v765_v38, %v763_v37 }
  0x4a   : > { %2771 = vrot.lane.b32.xlu1 %v2770_v51, %s3256_s21  ;;  %1247 = vst.msk [vmem:[#allocation3 + $0x10] sm:$0xff] %vm1038_vm3, %v3249_v0  ;;  %1249 = vst.msk [vmem:[#allocation3 + $0x20] sm:$0xff] %vm1038_vm3, %v3249_v0  ;;  %v536_v2 = vsel %vm472_vm2, %v440_v29, %v504_v59  ;;  %v2800_v39 = vpack.i.bf16 %v678_v15, %v676_v52  ;;  %v631_v40 = vld [vmem:[%s4344_s1 + $0x20] sm:$0xf]  ;;  %v739_v63 = vld [vmem:[#allocation2 + $0x150] ss:$2 sm:$0xff] }
  0x4b   : > { %1251 = vst.msk [vmem:[#allocation3 + $0x30] sm:$0xff] %vm1038_vm3, %v3249_v0  ;;  %1253 = vst.msk [vmem:[#allocation3 + $0x40] sm:$0xff] %vm1038_vm3, %v3249_v0  ;;  %v537_v36 = vsel %vm473_vm4, %v441_v32, %v505_v34  ;;  %v691_v41 = vld [vmem:[#allocation2 + $0x138] ss:$2 sm:$0xff]  ;;  %v693_v42 = vld [vmem:[#allocation2 + $0x168] ss:$2 sm:$0xff]  ;;  %v1107_v43 = vpack.c.bf16 %v631_v40, %v631_v40 }
  0x4c   : > { %1255 = vst.msk [vmem:[#allocation3 + $0x50] sm:$0xff] %vm1038_vm3, %v3249_v0  ;;  %1257 = vst.msk [vmem:[#allocation3 + $0x60] sm:$0xff] %vm1038_vm3, %v3249_v0  ;;  %2766 = vrot.lane.b32.xlu0 %v2765_v1, %s3256_s21  ;;  %2603 = vmatpush3.bf16.msra.mxu0 %v1106_v24  ;;  %v672_v45 = vld [vmem:[#allocation2 + $0xc2] ss:$2 sm:$0xff]  ;;  %v674_v46 = vld [vmem:[#allocation2 + $0xf2] ss:$2 sm:$0xff]  ;;  %v2810_v47 = vpack.i.bf16 %v693_v42, %v691_v41 }
  0x4d   : > { %1259 = vst.msk [vmem:[#allocation3 + $0x70] sm:$0xff] %vm1038_vm3, %v3249_v0  ;;  %1261 = vst.msk [vmem:[#allocation3 + $0x80] sm:$0xff] %vm1038_vm3, %v3249_v0  ;;  %v707_v48 = vld [vmem:[#allocation2 + $0x139] ss:$2 sm:$0xff]  ;;  %v709_v49 = vld [vmem:[#allocation2 + $0x169] ss:$2 sm:$0xff]  ;;  %2650 = vmatprep.subr.msk.bf16.mxu0 %vm1121_vm5, %v1107_v43  ;;  %v2795_v51 = vpack.i.bf16 %v674_v46, %v672_v45 }
  0x4e   : > { %2781 = vrot.lane.b32.xlu1 %v2780_v53, %s3251_s16  ;;  %1263 = vst.msk [vmem:[#allocation3 + $0x90] sm:$0xff] %vm1038_vm3, %v3249_v0  ;;  %v1123_v50 = vsel %vm1121_vm5, %v1107_v43, 0  ;;  %v687_v53 = vld [vmem:[#allocation2 + $0xd8] ss:$2 sm:$0xff]  ;;  %v2820_v55 = vpack.i.bf16 %v709_v49, %v707_v48  ;;  %v703_v60 = vld [vmem:[#allocation2 + $0xd9] ss:$2 sm:$0xff] }
  0x4f   : > { %625 = vst.msk [vmem:[#allocation2 + $0x181] sm:$0xff] %vm538_vm0, %v536_v2  ;;  %626 = vst.msk [vmem:[#allocation2 + $0x189] sm:$0xff] %vm538_vm0, %v537_v36  ;;  %v689_v54 = vld [vmem:[#allocation2 + $0x108] ss:$2 sm:$0xff]  ;;  %v705_v61 = vld [vmem:[#allocation2 + $0x109] ss:$2 sm:$0xff] }
  0x50   : > { %2776 = vrot.lane.b32.xlu0 %v2775_v35, %s4359_s28  ;;  %2605 = vmatpush3.bf16.msra.mxu0 %v1123_v50  ;;  %v723_v56 = vld [vmem:[#allocation2 + $0x13a] ss:$2 sm:$0xff]  ;;  %v725_v57 = vld [vmem:[#allocation2 + $0x16a] ss:$2 sm:$0xff]  ;;  %v2805_v58 = vpack.i.bf16 %v689_v54, %v687_v53  ;;  %v2815_v4 = vpack.i.bf16 %v705_v61, %v703_v60  ;;  %v755_v8 = vld [vmem:[#allocation2 + $0x151] ss:$2 sm:$0xff] }
  0x51   : > { %v2830_v62 = vpack.i.bf16 %v725_v57, %v723_v56  ;;  %v719_v5 = vld [vmem:[#allocation2 + $0xda] ss:$2 sm:$0xff]  ;;  %v721_v6 = vld [vmem:[#allocation2 + $0x10a] ss:$2 sm:$0xff]  ;;  %v751_v18 = vld [vmem:[#allocation2 + $0xf1] ss:$2 sm:$0xff] }
  0x52   : > { %2791 = vrot.lane.b32.xlu1 %v2790_v33, %s3251_s16  ;;  %s4363_s16 = smov 16   ;;  %v2825_v10 = vpack.i.bf16 %v721_v6, %v719_v5  ;;  %v735_v11 = vld [vmem:[#allocation2 + $0xf0] ss:$2 sm:$0xff]  ;;  %v737_v12 = vld [vmem:[#allocation2 + $0x120] ss:$2 sm:$0xff]  ;;  %v2845_v21 = vpack.i.bf16 %v753_v19, %v751_v18  ;;  %vm1047_vm6 = vcmask 97280  }
  0x53   : > { %v771_v14 = vld [vmem:[#allocation2 + $0x152] ss:$2 sm:$0xff]  ;;  %v2835_v17 = vpack.i.bf16 %v737_v12, %v735_v11  ;;  %v769_v23 = vld [vmem:[#allocation2 + $0x122] ss:$2 sm:$0xff]  ;;  %vm1056_vm7 = vcmask 130048   ;;  %vm1065_vm8 = vcmask 162816  }
  0x54   : > { %2786 = vrot.lane.b32.xlu0 %v2785_v44, %s4359_s28  ;;  %v767_v22 = vld [vmem:[#allocation2 + $0xf2] ss:$2 sm:$0xff]  ;;  %vm1074_vm9 = vcmask 195584   ;;  %vm1083_vm10 = vcmask 228352   ;;  %vm1092_vm11 = vcmask 261120   ;;  %vm1108_vm12 = vcmask 293888  }
  0x55   : > { %v2855_v24 = vpack.i.bf16 %v769_v23, %v767_v22  ;;  %v632_v15 = vld [vmem:[#allocation2] ss:$2 sm:$0xff]  ;;  %v634_v34 = vld [vmem:[#allocation2 + $0x30] ss:$2 sm:$0xff]  ;;  %s4366_s27 = smov 32  }
  0x56   : > { %2801 = vrot.lane.b32.xlu1 %v2800_v39, %s3250_s14  ;;  %v741_v3 = vld [vmem:[#allocation2 + $0x180] ss:$2 sm:$0xff]  ;;  %v757_v9 = vld [vmem:[#allocation2 + $0x181] ss:$2 sm:$0xff]  ;;  %v638_v38 = vld [vmem:[#allocation2 + $0x90] ss:$2 sm:$0xff] }
  0x57   : > { %v2840_v7 = vpack.i.bf16 %v741_v3, %v739_v63  ;;  %v2850_v13 = vpack.i.bf16 %v757_v9, %v755_v8  ;;  %v773_v16 = vld [vmem:[#allocation2 + $0x182] ss:$2 sm:$0xff] }
  0x58   : > { %2796 = vrot.lane.b32.xlu0 %v2795_v51, %s3250_s14  ;;  %v2860_v20 = vpack.i.bf16 %v773_v16, %v771_v14  ;;  %v636_v37 = vld [vmem:[#allocation2 + $0x60] ss:$2 sm:$0xff] }
  0x5a   : > { %2811 = vrot.lane.b32.xlu1 %v2810_v47, %s3252_s17 }
  0x5c   : > { %2806 = vrot.lane.b32.xlu0 %v2805_v58, %s3252_s17  ;;  %s3258_s17 = smov 40  }
  0x5e   : > { %2821 = vrot.lane.b32.xlu1 %v2820_v55, %s4363_s16 }
  0x60   : > { %2816 = vrot.lane.b32.xlu0 %v2815_v4, %s4363_s16 }
  0x62   : > { %2831 = vrot.lane.b32.xlu1 %v2830_v62, %s3254_s22 }
  0x64   : > { %2826 = vrot.lane.b32.xlu0 %v2825_v10, %s3254_s22  ;;  %s4364_s22 = smov 24  }
  0x66   : > { %2841 = vrot.lane.b32.xlu1 %v2840_v7, %s4355_s23 }
  0x68   : > { %2836 = vrot.lane.b32.xlu0 %v2835_v17, %s4355_s23 }
  0x6a   : > { %2851 = vrot.lane.b32.xlu1 %v2850_v13, %s3256_s21 }
  0x6c   : > { %2846 = vrot.lane.b32.xlu0 %v2845_v21, %s3256_s21  ;;  %s2571_s21 = sshll.u32 %s3334_s13, 7  ;;  %s3262_s13 = smov [#allocation4]  }
  0x6e   : > { %2861 = vrot.lane.b32.xlu1 %v2860_v20, %s4359_s28 }
  0x70   : > { %2856 = vrot.lane.b32.xlu0 %v2855_v24, %s4359_s28 }
  0xa4   : > { %v2717_v25 = vpop.permute.xlu1 %2716  ;;  %v2707_v26 = vpop.permute.xlu0 %2706 }
  0xa5   : > { %v2709_v52 = vunpack.i.h.bf16 %v2707_v26  ;;  %v2708_v59 = vunpack.i.l.bf16 %v2707_v26  ;;  %v2719_v40 = vunpack.i.h.bf16 %v2717_v25  ;;  %v2718_v41 = vunpack.i.l.bf16 %v2717_v25 }
  0xa7   : > { %v1030_v42 = vsel %vm538_vm0, %v632_v15, %v2708_v59  ;;  %v1031_v43 = vsel %vm538_vm0, %v634_v34, %v2709_v52 }
  0xa8   : > { %v2722_v27 = vpop.permute.xlu1 %2721  ;;  %v2712_v29 = vpop.permute.xlu0 %2711  ;;  %v1039_v53 = vsel %vm1038_vm3, %v1030_v42, %v2718_v41  ;;  %v1040_v54 = vsel %vm1038_vm3, %v1031_v43, %v2719_v40 }
  0xa9   : > { %v2714_v2 = vunpack.i.h.bf16 %v2712_v29  ;;  %v2713_v35 = vunpack.i.l.bf16 %v2712_v29  ;;  %v2724_v44 = vunpack.i.h.bf16 %v2722_v27  ;;  %v2723_v45 = vunpack.i.l.bf16 %v2722_v27 }
  0xab   : > { %v1033_v46 = vsel %vm538_vm0, %v638_v38, %v2714_v2  ;;  %v1032_v47 = vsel %vm538_vm0, %v636_v37, %v2713_v35 }
  0xac   : > { %v2732_v28 = vpop.permute.xlu1 %2731  ;;  %v1041_v57 = vsel %vm1038_vm3, %v1032_v47, %v2723_v45  ;;  %v1042_v58 = vsel %vm1038_vm3, %v1033_v46, %v2724_v44 }
  0xad   : > { %v2734_v48 = vunpack.i.h.bf16 %v2732_v28  ;;  %v2733_v49 = vunpack.i.l.bf16 %v2732_v28 }
  0xae   : > { %v2727_v30 = vpop.permute.xlu0 %2726 }
  0xaf   : > { %v2729_v55 = vunpack.i.h.bf16 %v2727_v30  ;;  %v2728_v56 = vunpack.i.l.bf16 %v2727_v30  ;;  %v1050_v62 = vsel %vm1047_vm6, %v1041_v57, %v2733_v49  ;;  %v1051_v63 = vsel %vm1047_vm6, %v1042_v58, %v2734_v48 }
  0xb0   : > { %v3729_v1 = vpop.permute.xlu1 %2741 }
  0xb1   : > { %v2744_v6 = vunpack.i.h.bf16 %v3729_v1  ;;  %v2743_v7 = vunpack.i.l.bf16 %v3729_v1  ;;  %v1049_v11 = vsel %vm1047_vm6, %v1040_v54, %v2729_v55  ;;  %v1048_v12 = vsel %vm1047_vm6, %v1039_v53, %v2728_v56 }
  0xb2   : > { %v2737_v32 = vpop.permute.xlu0 %2736 }
  0xb3   : > { %v2739_v60 = vunpack.i.h.bf16 %v2737_v32  ;;  %v2738_v61 = vunpack.i.l.bf16 %v2737_v32  ;;  %v1059_v52 = vsel %vm1056_vm7, %v1050_v62, %v2743_v7 }
  0xb4   : > { %v3731_v31 = vpop.permute.xlu1 %2751 }
  0xb5   : > { %v1057_v16 = vsel %vm1056_vm7, %v1048_v12, %v2738_v61  ;;  %v1058_v17 = vsel %vm1056_vm7, %v1049_v11, %v2739_v60  ;;  %v2754_v18 = vunpack.i.h.bf16 %v3731_v31  ;;  %v2753_v19 = vunpack.i.l.bf16 %v3731_v31  ;;  %v644_v60 = vld [vmem:[#allocation2 + $0x120] ss:$2 sm:$0xff]  ;;  %v646_v61 = vld [vmem:[#allocation2 + $0x150] ss:$2 sm:$0xff] }
  0xb6   : > { %v2747_v36 = vpop.permute.xlu0 %2746 }
  0xb7   : > { %v2749_v3 = vunpack.i.h.bf16 %v2747_v36  ;;  %v2748_v4 = vunpack.i.l.bf16 %v2747_v36  ;;  %v1068_v34 = vsel %vm1065_vm8, %v1059_v52, %v2753_v19 }
  0xb8   : > { %v3733_v33 = vpop.permute.xlu1 %2761 }
  0xb9   : > { %v1066_v20 = vsel %vm1065_vm8, %v1057_v16, %v2748_v4  ;;  %v1067_v21 = vsel %vm1065_vm8, %v1058_v17, %v2749_v3  ;;  %v2764_v22 = vunpack.i.h.bf16 %v3733_v33  ;;  %v2763_v23 = vunpack.i.l.bf16 %v3733_v33  ;;  %v640_v3 = vld [vmem:[#allocation2 + $0xc0] ss:$2 sm:$0xff]  ;;  %v642_v4 = vld [vmem:[#allocation2 + $0xf0] ss:$2 sm:$0xff] }
  0xba   : > { %v2757_v50 = vpop.permute.xlu0 %2756  ;;  %v1060_v33 = vsel %vm1056_vm7, %v1051_v63, %v2744_v6 }
  0xbb   : > { %v2759_v8 = vunpack.i.h.bf16 %v2757_v50  ;;  %v2758_v9 = vunpack.i.l.bf16 %v2757_v50  ;;  %v1069_v2 = vsel %vm1065_vm8, %v1060_v33, %v2754_v18  ;;  %v1077_v37 = vsel %vm1074_vm9, %v1068_v34, %v2763_v23 }
  0xbc   : > { %v3735_v39 = vpop.permute.xlu1 %2771  ;;  %v1078_v38 = vsel %vm1074_vm9, %v1069_v2, %v2764_v22 }
  0xbd   : > { %v1075_v25 = vsel %vm1074_vm9, %v1066_v20, %v2758_v9  ;;  %v1076_v26 = vsel %vm1074_vm9, %v1067_v21, %v2759_v8  ;;  %v2774_v1 = vunpack.i.h.bf16 %v3735_v39  ;;  %v2773_v30 = vunpack.i.l.bf16 %v3735_v39 }
  0xbe   : > { %v2767_v5 = vpop.permute.xlu0 %2766 }
  0xbf   : > { %v2769_v13 = vunpack.i.h.bf16 %v2767_v5  ;;  %v2768_v14 = vunpack.i.l.bf16 %v2767_v5  ;;  %v1086_v42 = vsel %vm1083_vm10, %v1077_v37, %v2773_v30  ;;  %v1087_v43 = vsel %vm1083_vm10, %v1078_v38, %v2774_v1 }
  0xc0   : > { %v3741_v51 = vpop.permute.xlu1 %2781 }
  0xc1   : > { %v1084_v31 = vsel %vm1083_vm10, %v1075_v25, %v2768_v14  ;;  %v1085_v32 = vsel %vm1083_vm10, %v1076_v26, %v2769_v13  ;;  %v2784_v57 = vunpack.i.h.bf16 %v3741_v51  ;;  %v2783_v58 = vunpack.i.l.bf16 %v3741_v51 }
  0xc2   : > { %v2777_v24 = vpop.permute.xlu0 %2776 }
  0xc3   : > { %v2779_v27 = vunpack.i.h.bf16 %v2777_v24  ;;  %v2778_v28 = vunpack.i.l.bf16 %v2777_v24  ;;  %v1035_v17 = vsel %vm538_vm0, %v642_v4, %v2784_v57  ;;  %v1034_v18 = vsel %vm538_vm0, %v640_v3, %v2783_v58 }
  0xc4   : > { %v3751_v10 = vpop.permute.xlu1 %2791 }
  0xc5   : > { %v1093_v59 = vsel %vm1092_vm11, %v1084_v31, %v2778_v28  ;;  %v1094_v15 = vsel %vm1092_vm11, %v1085_v32, %v2779_v27  ;;  %v2794_v55 = vunpack.i.h.bf16 %v3751_v10  ;;  %v2793_v56 = vunpack.i.l.bf16 %v3751_v10 }
  0xc6   : > { %v2787_v35 = vpop.permute.xlu0 %2786  ;;  %v1101_v36 = vpack.c.bf16 %v1094_v15, %v1093_v59 }
  0xc7   : > { %v2789_v39 = vunpack.i.h.bf16 %v2787_v35  ;;  %v2788_v40 = vunpack.i.l.bf16 %v2787_v35  ;;  %v1037_v10 = vsel %vm538_vm0, %v646_v61, %v2794_v55  ;;  %v1036_v14 = vsel %vm538_vm0, %v644_v60, %v2793_v56 }
  0xc8   : > { %v2802_v29 = vpop.permute.xlu1 %2801  ;;  %2606 = vmatprep.mubr.msk.bf16.mxu0 %vm1108_vm12, %v1101_v36  ;;  %vm1245_vm0 = vcmask 58368  }
  0xc9   : > { %v1096_v44 = vsel %vm1092_vm11, %v1087_v43, %v2789_v39  ;;  %v1095_v45 = vsel %vm1092_vm11, %v1086_v42, %v2788_v40  ;;  %v2804_v62 = vunpack.i.h.bf16 %v2802_v29  ;;  %v2803_v63 = vunpack.i.l.bf16 %v2802_v29  ;;  %1252 = vst.msk [vmem:[#allocation3 + $0x38] sm:$0x3] %vm1245_vm0, %v3249_v0  ;;  %1246 = vst.msk [vmem:[#allocation3 + $0x8] sm:$0x3] %vm1245_vm0, %v3249_v0 }
  0xca   : > { %v1102_v46 = vpack.c.bf16 %v1096_v44, %v1095_v45  ;;  %v2797_v47 = vpop.permute.xlu0 %2796  ;;  %1248 = vst.msk [vmem:[#allocation3 + $0x18] sm:$0x3] %vm1245_vm0, %v3249_v0  ;;  %1250 = vst.msk [vmem:[#allocation3 + $0x28] sm:$0x3] %vm1245_vm0, %v3249_v0 }
  0xcb   : > { %v2799_v5 = vunpack.i.h.bf16 %v2797_v47  ;;  %v2798_v6 = vunpack.i.l.bf16 %v2797_v47  ;;  %v1045_v19 = vsel %vm1038_vm3, %v1036_v14, %v2803_v63  ;;  %v1046_v20 = vsel %vm1038_vm3, %v1037_v10, %v2804_v62  ;;  %1254 = vst.msk [vmem:[#allocation3 + $0x48] sm:$0x3] %vm1245_vm0, %v3249_v0  ;;  %1256 = vst.msk [vmem:[#allocation3 + $0x58] sm:$0x3] %vm1245_vm0, %v3249_v0 }
  0xcc   : > { %v2812_v41 = vpop.permute.xlu1 %2811  ;;  %2607 = vmatmul.mubr.msk.bf16.vlgmr.msra.gmra.mrb[0].mxu0 %vm1108_vm12, %v1102_v46  ;;  %1258 = vst.msk [vmem:[#allocation3 + $0x68] sm:$0x3] %vm1245_vm0, %v3249_v0  ;;  %1260 = vst.msk [vmem:[#allocation3 + $0x78] sm:$0x3] %vm1245_vm0, %v3249_v0 }
  0xcd   : > { %v2814_v7 = vunpack.i.h.bf16 %v2812_v41  ;;  %v2813_v8 = vunpack.i.l.bf16 %v2812_v41  ;;  %v1044_v21 = vsel %vm1038_vm3, %v1035_v17, %v2799_v5  ;;  %v1043_v22 = vsel %vm1038_vm3, %v1034_v18, %v2798_v6  ;;  %1262 = vst.msk [vmem:[#allocation3 + $0x88] sm:$0x3] %vm1245_vm0, %v3249_v0  ;;  %1264 = vst.msk [vmem:[#allocation3 + $0x98] sm:$0x3] %vm1245_vm0, %v3249_v0 }
  0xce   : > { %v2807_v49 = vpop.permute.xlu0 %2806  ;;  %vm1662_vm0 = vcmask 457728  }
  0xcf   : > { %v2809_v16 = vunpack.i.h.bf16 %v2807_v49  ;;  %v2808_v51 = vunpack.i.l.bf16 %v2807_v49  ;;  %v1054_v23 = vsel %vm1047_vm6, %v1045_v19, %v2813_v8  ;;  %v1055_v24 = vsel %vm1047_vm6, %v1046_v20, %v2814_v7  ;;  %v3834_v8 = vld [vmem:[%s4347_s4] ss:$0 sm:$0xff] }
  0xd0   : > { %v2822_v48 = vpop.permute.xlu1 %2821 }
  0xd1   : > { %v2824_v11 = vunpack.i.h.bf16 %v2822_v48  ;;  %v2823_v12 = vunpack.i.l.bf16 %v2822_v48  ;;  %v1052_v30 = vsel %vm1047_vm6, %v1043_v22, %v2808_v51  ;;  %v1053_v31 = vsel %vm1047_vm6, %v1044_v21, %v2809_v16 }
  0xd2   : > { %v2817_v53 = vpop.permute.xlu0 %2816 }
  0xd3   : > { %v1063_v26 = vsel %vm1056_vm7, %v1054_v23, %v2823_v12  ;;  %v1064_v27 = vsel %vm1056_vm7, %v1055_v24, %v2824_v11  ;;  %v2819_v33 = vunpack.i.h.bf16 %v2817_v53  ;;  %v2818_v59 = vunpack.i.l.bf16 %v2817_v53  ;;  %v3839_v11 = vld [vmem:[%s4348_s5] ss:$0 sm:$0xff] }
  0xd4   : > { %v2832_v50 = vpop.permute.xlu1 %2831 }
  0xd5   : > { %v2834_v28 = vunpack.i.h.bf16 %v2832_v50  ;;  %v2833_v29 = vunpack.i.l.bf16 %v2832_v50  ;;  %v1061_v47 = vsel %vm1056_vm7, %v1052_v30, %v2818_v59  ;;  %v1062_v48 = vsel %vm1056_vm7, %v1053_v31, %v2819_v33  ;;  %v3862_v33 = vld [vmem:[#allocation3 + $0x2] sm:$0xff] }
  0xd6   : > { %v2827_v9 = vpop.permute.xlu0 %2826 }
  0xd7   : > { %v2829_v2 = vunpack.i.h.bf16 %v2827_v9  ;;  %v2828_v35 = vunpack.i.l.bf16 %v2827_v9  ;;  %v1072_v39 = vsel %vm1065_vm8, %v1063_v26, %v2833_v29  ;;  %v1073_v40 = vsel %vm1065_vm8, %v1064_v27, %v2834_v28  ;;  %v3853_v29 = vld [vmem:[#allocation3 + $0x1] sm:$0xff] }
  0xd8   : > { %v2842_v54 = vpop.permute.xlu1 %2841 }
  0xd9   : > { %v2844_v32 = vunpack.i.h.bf16 %v2842_v54  ;;  %v2843_v52 = vunpack.i.l.bf16 %v2842_v54  ;;  %v1070_v53 = vsel %vm1065_vm8, %v1061_v47, %v2828_v35  ;;  %v1071_v54 = vsel %vm1065_vm8, %v1062_v48, %v2829_v2  ;;  %v1277_v47 = vld [vmem:[%s4349_s6 + $0x18] sm:$0xff] }
  0xda   : > { %v2837_v25 = vpop.permute.xlu0 %2836  ;;  %vm1702_vm8 = vcmask 1043456  }
  0xdb   : > { %v2839_v41 = vunpack.i.h.bf16 %v2837_v25  ;;  %v2838_v42 = vunpack.i.l.bf16 %v2837_v25  ;;  %v1081_v43 = vsel %vm1074_vm9, %v1072_v39, %v2843_v52  ;;  %v1082_v44 = vsel %vm1074_vm9, %v1073_v40, %v2844_v32  ;;  %v1274_v39 = vld [vmem:[%s4349_s6] sm:$0xff]  ;;  %v1275_v40 = vld [vmem:[%s4349_s6 + $0x8] sm:$0xff] }
  0xdc   : > { %v2852_v13 = vpop.permute.xlu1 %2851 }
  0xdd   : > { %v2854_v15 = vunpack.i.h.bf16 %v2852_v13  ;;  %v2853_v34 = vunpack.i.l.bf16 %v2852_v13  ;;  %v1079_v58 = vsel %vm1074_vm9, %v1070_v53, %v2838_v42  ;;  %v1080_v60 = vsel %vm1074_vm9, %v1071_v54, %v2839_v41 }
  0xde   : > { %v2847_v36 = vpop.permute.xlu0 %2846 }
  0xdf   : > { %v2849_v45 = vunpack.i.h.bf16 %v2847_v36  ;;  %v2848_v46 = vunpack.i.l.bf16 %v2847_v36  ;;  %v1090_v49 = vsel %vm1083_vm10, %v1081_v43, %v2853_v34  ;;  %v1091_v50 = vsel %vm1083_vm10, %v1082_v44, %v2854_v15 }
  0xe0   : > { %v2862_v1 = vpop.permute.xlu1 %2861  ;;  %v1684_v43 = vpack.c.bf16 %v1275_v40, %v1274_v39 }
  0xe1   : > { %v2864_v37 = vunpack.i.h.bf16 %v2862_v1  ;;  %v2863_v38 = vunpack.i.l.bf16 %v2862_v1  ;;  %v1088_v63 = vsel %vm1083_vm10, %v1079_v58, %v2848_v46  ;;  %v1089_v3 = vsel %vm1083_vm10, %v1080_v60, %v2849_v45  ;;  %v1276_v46 = vld [vmem:[%s4349_s6 + $0x10] sm:$0xff]  ;;  %v1279_v58 = vld [vmem:[%s4349_s6 + $0x28] sm:$0xff] }
  0xe2   : > { %v2857_v57 = vpop.permute.xlu0 %2856  ;;  %2614 = vmatprep.subr.bf16.mxu1 %v1684_v43  ;;  %vm1644_vm10 = vcmask 326656  }
  0xe3   : > { %v1099_v55 = vsel %vm1092_vm11, %v1090_v49, %v2863_v38  ;;  %v1100_v56 = vsel %vm1092_vm11, %v1091_v50, %v2864_v37  ;;  %v2859_v61 = vunpack.i.h.bf16 %v2857_v57  ;;  %v2858_v62 = vunpack.i.l.bf16 %v2857_v57  ;;  %2615 = vmatpush3.bf16.msra.mxu1 %v1684_v43  ;;  %v1278_v57 = vld [vmem:[%s4349_s6 + $0x20] sm:$0xff] }
  0xe4   : > { %v1104_v4 = vpack.c.bf16 %v1100_v56, %v1099_v55  ;;  %v1685_v50 = vpack.c.bf16 %v1277_v47, %v1276_v46  ;;  %v3956_v47 = vld [vmem:[#allocation3 + $0x90] sm:$0xff] }
  0xe5   : > { %v1097_v5 = vsel %vm1092_vm11, %v1088_v63, %v2858_v62  ;;  %v1098_v6 = vsel %vm1092_vm11, %v1089_v3, %v2859_v61  ;;  %v1686_v62 = vpack.c.bf16 %v1279_v58, %v1278_v57 }
  0xe6   : > { %v1103_v7 = vpack.c.bf16 %v1098_v6, %v1097_v5  ;;  %2616 = vmatprep.subr.bf16.mxu1 %v1685_v50 }
  0xe7   : > { %2617 = vmatpush3.bf16.msra.mxu1 %v1685_v50 }
  0xe8   : > { %2610 = vmatprep.mubr.msk.bf16.mxu0 %vm1108_vm12, %v1103_v7  ;;  %2618 = vmatprep.subr.bf16.mxu1 %v1686_v62 }
  0xe9   : > { %2611 = vmatmul.mubr.msk.bf16.gmra.mrb[4].mxu0 %vm1108_vm12, %v1104_v4  ;;  %vm1653_vm12 = vcmask 392192  }
  0xeb   : > { %2619 = vmatpush3.bf16.msra.mxu1 %v1686_v62 }
 0x19f   : > { %v2608_v9 = vpop.f32.mrb[0].mxu0 }
 0x1a0   : > { %v1199_v12 = vmul.f32 %v2608_v9, %v3834_v8  ;;  %v1159_v13 = vpop.f32.mrb[1].mxu0 }
 0x1a1   : > { %v1197_v10 = vmul.f32 %v3834_v8, %v1159_v13  ;;  %v2609_v14 = vpop.f32.mrb[2].mxu0 }
 0x1a2   : > { %v1214_v16 = vadd.f32 %v3839_v11, %v1199_v12  ;;  %v1200_v0 = vmul.f32 %v2609_v14, %v3834_v8  ;;  %v1162_v51 = vpop.f32.mrb[3].mxu0 }
 0x1a3   : > { %v1212_v17 = vadd.f32 %v3839_v11, %v1197_v10  ;;  %v1198_v18 = vmul.f32 %v3834_v8, %v1162_v51  ;;  %v1280_v51 = vld [vmem:[%s4349_s6 + $0x30] sm:$0xff] }
 0x1a4   : > { %vm1222_vm13 = vcmp.gt.f32.partialorder %v1214_v16, 0.0  ;;  %v1230_v19 = vmul.f32 0.01, %v1214_v16  ;;  %v1215_v20 = vadd.f32 %v3839_v11, %v1200_v0 }
 0x1a5   : > { %vm1220_vm14 = vcmp.gt.f32.partialorder %v1212_v17, 0.0  ;;  %v1228_v21 = vmul.f32 0.01, %v1212_v17  ;;  %v1213_v22 = vadd.f32 %v3839_v11, %v1198_v18 }
 0x1a6   : > { %v1238_v23 = vsel %vm1222_vm13, %v1214_v16, %v1230_v19  ;;  %vm1223_vm15 = vcmp.gt.f32.partialorder %v1215_v20, 0.0  ;;  %v1231_v24 = vmul.f32 0.01, %v1215_v20  ;;  %vm1671_vm13 = vcmask 523264  }
 0x1a7   : > { %1268 = vst.msk [vmem:[#allocation3 + $0x31] sm:$0xff] %vm1038_vm3, %v1238_v23  ;;  %v1236_v25 = vsel %vm1220_vm14, %v1212_v17, %v1228_v21  ;;  %vm1221_vm1 = vcmp.gt.f32.partialorder %v1213_v22, 0.0  ;;  %v1229_v26 = vmul.f32 0.01, %v1213_v22  ;;  %v1281_v17 = vld [vmem:[%s4349_s6 + $0x38] sm:$0xff]  ;;  %vm1689_vm14 = vcmask 588800  }
 0x1a8   : > { %1266 = vst.msk [vmem:[#allocation3 + $0x11] sm:$0xff] %vm1038_vm3, %v1236_v25  ;;  %v1239_v27 = vsel %vm1223_vm15, %v1215_v20, %v1231_v24  ;;  %v1687_v19 = vpack.c.bf16 %v1281_v17, %v1280_v51 }
 0x1a9   : > { %1269 = vst.msk [vmem:[#allocation3 + $0x41] sm:$0xff] %vm1038_vm3, %v1239_v27  ;;  %v1237_v28 = vsel %vm1221_vm1, %v1213_v22, %v1229_v26  ;;  %v1282_v22 = vld [vmem:[%s4349_s6 + $0x40] sm:$0xff] }
 0x1aa   : > { %1267 = vst.msk [vmem:[#allocation3 + $0x21] sm:$0xff] %vm1038_vm3, %v1237_v28  ;;  %2620 = vmatprep.subr.bf16.mxu1 %v1687_v19  ;;  %v1688_v23 = vpack.c.bf16 %v1282_v22, %v1282_v22 }
 0x1ab   : > { %2621 = vmatpush3.bf16.msra.mxu1 %v1687_v19 }
 0x1ac   : > { %2651 = vmatprep.subr.msk.bf16.mxu1 %vm1702_vm8, %v1688_v23  ;;  %v1704_v24 = vsel %vm1702_vm8, %v1688_v23, 0 }
 0x1ae   : > { %v3856_v31 = vld [vmem:[#allocation3 + $0x30] sm:$0xff] }
 0x1af   : > { %v1292_v1 = vld [vmem:[#allocation3 + $0x11] sm:$0xff]  ;;  %2623 = vmatpush3.bf16.msra.mxu1 %v1704_v24 }
 0x1b0   : > { %v2865_v30 = vpack.i.bf16 %v1292_v1, %v3853_v29  ;;  %v3858_v32 = vld [vmem:[#allocation3 + $0x40] sm:$0xff]  ;;  %v1300_v59 = vld [vmem:[#allocation3 + $0x12] sm:$0xff] }
 0x1b1   : > { %v2875_v52 = vpack.i.bf16 %v3858_v32, %v3856_v31  ;;  %v3865_v15 = vld [vmem:[#allocation3 + $0x41] sm:$0xff]  ;;  %v2870_v34 = vpack.i.bf16 %v1300_v59, %v3862_v33  ;;  %v1317_v2 = vld [vmem:[#allocation3 + $0x31] sm:$0xff] }
 0x1b2   : > { %2866 = vrot.lane.b32.xlu0 %v2865_v30, %s3250_s14  ;;  %v2880_v35 = vpack.i.bf16 %v3865_v15, %v1317_v2  ;;  %v3870_v36 = vld [vmem:[#allocation3 + $0x20] sm:$0xff]  ;;  %v3876_v38 = vld [vmem:[#allocation3 + $0x10] sm:$0xff] }
 0x1b3   : > { %2876 = vrot.lane.b32.xlu1 %v2875_v52, %s4355_s23  ;;  %v3873_v37 = vld [vmem:[#allocation3 + $0x42] sm:$0xff]  ;;  %v2900_v41 = vpack.i.bf16 %v3870_v36, %v3876_v38  ;;  %v1325_v42 = vld [vmem:[#allocation3 + $0x32] sm:$0xff] }
 0x1b4   : > { %v2885_v44 = vpack.i.bf16 %v3873_v37, %v1325_v42  ;;  %v1316_v45 = vld [vmem:[#allocation3 + $0x21] sm:$0xff] }
 0x1b5   : > { %v2905_v49 = vpack.i.bf16 %v1316_v45, %v1292_v1  ;;  %v2890_v55 = vpack.i.bf16 %v1317_v2, %v1316_v45  ;;  %v1324_v56 = vld [vmem:[#allocation3 + $0x22] sm:$0xff] }
 0x1b6   : > { %2871 = vrot.lane.b32.xlu0 %v2870_v34, %s4363_s16  ;;  %v2910_v7 = vpack.i.bf16 %v1324_v56, %v1300_v59  ;;  %v2895_v13 = vpack.i.bf16 %v1325_v42, %v1324_v56  ;;  %v3971_v56 = vld [vmem:[#allocation3 + $0x92] sm:$0xff] }
 0x1b7   : > { %2881 = vrot.lane.b32.xlu1 %v2880_v35, %s4359_s28 }
 0x1ba   : > { %2901 = vrot.lane.b32.xlu0 %v2900_v41, %s4355_s23  ;;  %s4357_s23 = smov 64  }
 0x1bb   : > { %2886 = vrot.lane.b32.xlu1 %v2885_v44, %s3258_s17 }
 0x1bc   : > { %v2612_v48 = vpop.f32.mrb[4].mxu0 }
 0x1bd   : > { %v1203_v53 = vmul.f32 %v2612_v48, %v3834_v8  ;;  %v1175_v54 = vpop.f32.mrb[5].mxu0 }
 0x1be   : > { %v1201_v60 = vmul.f32 %v3834_v8, %v1175_v54  ;;  %2906 = vrot.lane.b32.xlu0 %v2905_v49, %s4359_s28  ;;  %v2613_v61 = vpop.f32.mrb[6].mxu0  ;;  %v3967_v54 = vld [vmem:[#allocation3 + $0x91] sm:$0xff] }
 0x1bf   : > { %v1218_v63 = vadd.f32 %v3839_v11, %v1203_v53  ;;  %v1204_v3 = vmul.f32 %v2613_v61, %v3834_v8  ;;  %2891 = vrot.lane.b32.xlu1 %v2890_v55, %s3250_s14  ;;  %v1178_v4 = vpop.f32.mrb[7].mxu0 }
 0x1c0   : > { %v1216_v5 = vadd.f32 %v3839_v11, %v1201_v60  ;;  %v1202_v6 = vmul.f32 %v3834_v8, %v1178_v4  ;;  %v2915_v8 = vpack.i.bf16 %v3856_v31, %v3870_v36 }
 0x1c1   : > { %vm1226_vm2 = vcmp.gt.f32.partialorder %v1218_v63, 0.0  ;;  %v1234_v9 = vmul.f32 0.01, %v1218_v63  ;;  %v1219_v12 = vadd.f32 %v3839_v11, %v1204_v3 }
 0x1c2   : > { %vm1224_vm4 = vcmp.gt.f32.partialorder %v1216_v5, 0.0  ;;  %v1232_v10 = vmul.f32 0.01, %v1216_v5  ;;  %v1217_v14 = vadd.f32 %v3839_v11, %v1202_v6  ;;  %2911 = vrot.lane.b32.xlu0 %v2910_v7, %s3258_s17 }
 0x1c3   : > { %v1242_v16 = vsel %vm1226_vm2, %v1218_v63, %v1234_v9  ;;  %vm1227_vm5 = vcmp.gt.f32.partialorder %v1219_v12, 0.0  ;;  %v1235_v0 = vmul.f32 0.01, %v1219_v12  ;;  %2896 = vrot.lane.b32.xlu1 %v2895_v13, %s4363_s16 }
 0x1c4   : > { %1272 = vst.msk [vmem:[#allocation3 + $0x71] sm:$0xff] %vm1038_vm3, %v1242_v16  ;;  %v1240_v11 = vsel %vm1224_vm4, %v1216_v5, %v1232_v10  ;;  %vm1225_vm6 = vcmp.gt.f32.partialorder %v1217_v14, 0.0  ;;  %v1233_v18 = vmul.f32 0.01, %v1217_v14 }
 0x1c5   : > { %1270 = vst.msk [vmem:[#allocation3 + $0x51] sm:$0xff] %vm1038_vm3, %v1240_v11  ;;  %v1243_v20 = vsel %vm1227_vm5, %v1219_v12, %v1235_v0 }
 0x1c6   : > { %1273 = vst.msk [vmem:[#allocation3 + $0x81] sm:$0xff] %vm1038_vm3, %v1243_v20  ;;  %v1241_v21 = vsel %vm1225_vm6, %v1217_v14, %v1233_v18  ;;  %2916 = vrot.lane.b32.xlu0 %v2915_v8, %s3259_s24 }
 0x1c7   : > { %1271 = vst.msk [vmem:[#allocation3 + $0x61] sm:$0xff] %vm1038_vm3, %v1241_v21 }
 0x1ca   : > { %2921 = vrot.lane.b32.xlu0 %v2890_v55, %s3260_s26 }
 0x1cb   : > { %v3948_v2 = vld [vmem:[#allocation3 + $0x70] sm:$0xff] }
 0x1cc   : > { %v3932_v25 = vld [vmem:[#allocation3 + $0x50] sm:$0xff] }
 0x1cd   : > { %v2930_v26 = vpack.i.bf16 %v3932_v25, %v3858_v32  ;;  %v1351_v27 = vld [vmem:[#allocation3 + $0x52] sm:$0xff]  ;;  %v1314_v59 = vld [vmem:[#allocation3 + $0x80] sm:$0xff] }
 0x1ce   : > { %2926 = vrot.lane.b32.xlu0 %v2895_v13, %s4357_s23  ;;  %v1343_v28 = vld [vmem:[#allocation3 + $0x51] sm:$0xff]  ;;  %v2945_v1 = vpack.i.bf16 %v1351_v27, %v3873_v37  ;;  %v3942_v52 = vld [vmem:[#allocation3 + $0x60] sm:$0xff]  ;;  %v2955_v35 = vpack.i.bf16 %v1314_v59, %v3948_v2  ;;  %v2970_v49 = vpack.i.bf16 %v3956_v47, %v1314_v59 }
 0x1cf   : > { %2931 = vrot.lane.b32.xlu1 %v2930_v26, %s3259_s24  ;;  %v2935_v30 = vpack.i.bf16 %v1343_v28, %v3865_v15  ;;  %v2990_v34 = vpack.i.bf16 %v3942_v52, %v3932_v25  ;;  %v1320_v37 = vld [vmem:[#allocation3 + $0x61] sm:$0xff]  ;;  %v1321_v40 = vld [vmem:[#allocation3 + $0x71] sm:$0xff]  ;;  %v3005_v48 = vpack.i.bf16 %v3948_v2, %v3942_v52 }
 0x1d0   : > { %v1322_v15 = vld [vmem:[#allocation3 + $0x81] sm:$0xff]  ;;  %v2995_v39 = vpack.i.bf16 %v1320_v37, %v1343_v28  ;;  %v1329_v45 = vld [vmem:[#allocation3 + $0x72] sm:$0xff]  ;;  %v3010_v50 = vpack.i.bf16 %v1321_v40, %v1320_v37 }
 0x1d1   : > { %v2960_v41 = vpack.i.bf16 %v1322_v15, %v1321_v40  ;;  %v1328_v42 = vld [vmem:[#allocation3 + $0x62] sm:$0xff]  ;;  %v2985_v55 = vpack.i.bf16 %v3967_v54, %v1322_v15 }
 0x1d2   : > { %2946 = vrot.lane.b32.xlu0 %v2945_v1, %s4357_s23  ;;  %v1330_v43 = vld [vmem:[#allocation3 + $0x82] sm:$0xff]  ;;  %v3000_v44 = vpack.i.bf16 %v1328_v42, %v1351_v27  ;;  %v3015_v53 = vpack.i.bf16 %v1329_v45, %v1328_v42 }
 0x1d3   : > { %2936 = vrot.lane.b32.xlu1 %v2935_v30, %s3260_s26  ;;  %v2965_v46 = vpack.i.bf16 %v1330_v43, %v1329_v45  ;;  %v3020_v57 = vpack.i.bf16 %v3971_v56, %v1330_v43  ;;  %v3978_v13 = vld [vmem:[#allocation3] sm:$0xff] }
 0x1d6   : > { %2951 = vrot.lane.b32.xlu0 %v2945_v1, %s4363_s16 }
 0x1d7   : > { %2941 = vrot.lane.b32.xlu1 %v2935_v30, %s3250_s14 }
 0x1da   : > { %2991 = vrot.lane.b32.xlu0 %v2990_v34, %s4364_s22 }
 0x1db   : > { %2956 = vrot.lane.b32.xlu1 %v2955_v35, %s4364_s22 }
 0x1de   : > { %2996 = vrot.lane.b32.xlu0 %v2995_v39, %s4359_s28 }
 0x1df   : > { %2961 = vrot.lane.b32.xlu1 %v2960_v41, %s4359_s28 }
 0x1e2   : > { %3001 = vrot.lane.b32.xlu0 %v3000_v44, %s3258_s17 }
 0x1e3   : > { %2966 = vrot.lane.b32.xlu1 %v2965_v46, %s3258_s17 }
 0x1e6   : > { %3006 = vrot.lane.b32.xlu0 %v3005_v48, %s3259_s24 }
 0x1e7   : > { %2971 = vrot.lane.b32.xlu1 %v2970_v49, %s3259_s24 }
 0x1ea   : > { %3011 = vrot.lane.b32.xlu0 %v3010_v50, %s3260_s26 }
 0x1eb   : > { %2976 = vrot.lane.b32.xlu1 %v3010_v50, %s3250_s14 }
 0x1ee   : > { %3016 = vrot.lane.b32.xlu0 %v3015_v53, %s4357_s23 }
 0x1ef   : > { %2981 = vrot.lane.b32.xlu1 %v3015_v53, %s4363_s16 }
 0x1f3   : > { %2986 = vrot.lane.b32.xlu1 %v2985_v55, %s3260_s26 }
 0x1f7   : > { %3021 = vrot.lane.b32.xlu1 %v3020_v57, %s4357_s23 }
 0x224   : > { %v2867_v58 = vpop.permute.xlu0 %2866 }
 0x225   : > { %v2877_v60 = vpop.permute.xlu1 %2876  ;;  %v2869_v9 = vunpack.i.h.bf16 %v2867_v58  ;;  %v2868_v12 = vunpack.i.l.bf16 %v2867_v58 }
 0x226   : > { %v2879_v51 = vunpack.i.h.bf16 %v2877_v60  ;;  %v2878_v17 = vunpack.i.l.bf16 %v2877_v60 }
 0x227   : > { %v1612_v19 = vsel %vm1038_vm3, %v3978_v13, %v2868_v12  ;;  %v1613_v20 = vsel %vm1038_vm3, %v3876_v38, %v2869_v9 }
 0x228   : > { %v2872_v61 = vpop.permute.xlu0 %2871 }
 0x229   : > { %v2882_v62 = vpop.permute.xlu1 %2881  ;;  %v2874_v11 = vunpack.i.h.bf16 %v2872_v61  ;;  %v2873_v18 = vunpack.i.l.bf16 %v2872_v61 }
 0x22a   : > { %v2884_v45 = vunpack.i.h.bf16 %v2882_v62  ;;  %v2883_v46 = vunpack.i.l.bf16 %v2882_v62 }
 0x22b   : > { %v1620_v38 = vsel %vm1056_vm7, %v1612_v19, %v2873_v18  ;;  %v1621_v35 = vsel %vm1056_vm7, %v1613_v20, %v2874_v11 }
 0x22c   : > { %v2902_v63 = vpop.permute.xlu0 %2901 }
 0x22d   : > { %v3976_v3 = vpop.permute.xlu1 %2886  ;;  %v2904_v21 = vunpack.i.h.bf16 %v2902_v63  ;;  %v2903_v22 = vunpack.i.l.bf16 %v2902_v63 }
 0x22e   : > { %v2889_v12 = vunpack.i.h.bf16 %v3976_v3 }
 0x22f   : > { %v1629_v39 = vsel %vm1074_vm9, %v1621_v35, %v2904_v21 }
 0x230   : > { %v2907_v4 = vpop.permute.xlu0 %2906 }
 0x231   : > { %v2892_v5 = vpop.permute.xlu1 %2891  ;;  %v2909_v23 = vunpack.i.h.bf16 %v2907_v4  ;;  %v2908_v24 = vunpack.i.l.bf16 %v2907_v4 }
 0x232   : > { %v2894_v10 = vunpack.i.h.bf16 %v2892_v5  ;;  %v2893_v14 = vunpack.i.l.bf16 %v2892_v5 }
 0x233   : > { %v1637_v42 = vsel %vm1092_vm11, %v1629_v39, %v2909_v23 }
 0x234   : > { %v2912_v6 = vpop.permute.xlu0 %2911  ;;  %v1615_v26 = vsel %vm1038_vm3, %v3856_v31, %v2894_v10  ;;  %v1614_v27 = vsel %vm1038_vm3, %v3870_v36, %v2893_v14  ;;  %v1628_v31 = vsel %vm1074_vm9, %v1620_v38, %v2903_v22  ;;  %v2888_v10 = vunpack.i.l.bf16 %v3976_v3 }
 0x235   : > { %v2897_v7 = vpop.permute.xlu1 %2896  ;;  %v2914_v28 = vunpack.i.h.bf16 %v2912_v6  ;;  %v2913_v1 = vunpack.i.l.bf16 %v2912_v6  ;;  %v1636_v41 = vsel %vm1092_vm11, %v1628_v31, %v2908_v24 }
 0x236   : > { %v2899_v16 = vunpack.i.h.bf16 %v2897_v7  ;;  %v2898_v0 = vunpack.i.l.bf16 %v2897_v7 }
 0x237   : > { %v1645_v48 = vsel %vm1644_vm10, %v1636_v41, %v2913_v1  ;;  %v1646_v49 = vsel %vm1644_vm10, %v1637_v42, %v2914_v28 }
 0x238   : > { %v2917_v8 = vpop.permute.xlu0 %2916  ;;  %v1622_v30 = vsel %vm1056_vm7, %v1614_v27, %v2898_v0  ;;  %v1623_v59 = vsel %vm1056_vm7, %v1615_v26, %v2899_v16 }
 0x239   : > { %v2919_v37 = vunpack.i.h.bf16 %v2917_v8  ;;  %v2918_v15 = vunpack.i.l.bf16 %v2917_v8  ;;  %v1630_v43 = vsel %vm1074_vm9, %v1622_v30, %v2878_v17  ;;  %v1631_v44 = vsel %vm1074_vm9, %v1623_v59, %v2879_v51 }
 0x23a   : > { %v1638_v61 = vsel %vm1092_vm11, %v1630_v43, %v2883_v46  ;;  %v1639_v63 = vsel %vm1092_vm11, %v1631_v44, %v2884_v45 }
 0x23b   : > { %v1654_v53 = vsel %vm1653_vm12, %v1645_v48, %v2918_v15  ;;  %v1655_v55 = vsel %vm1653_vm12, %v1646_v49, %v2919_v37  ;;  %v1647_v8 = vsel %vm1644_vm10, %v1638_v61, %v2888_v10  ;;  %v1648_v51 = vsel %vm1644_vm10, %v1639_v63, %v2889_v12 }
 0x23c   : > { %v2922_v34 = vpop.permute.xlu0 %2921 }
 0x23d   : > { %v2924_v40 = vunpack.i.h.bf16 %v2922_v34  ;;  %v2923_v36 = vunpack.i.l.bf16 %v2922_v34 }
 0x23f   : > { %v1663_v4 = vsel %vm1662_vm0, %v1654_v53, %v2923_v36  ;;  %v1664_v62 = vsel %vm1662_vm0, %v1655_v55, %v2924_v40 }
 0x240   : > { %v2927_v50 = vpop.permute.xlu0 %2926 }
 0x241   : > { %v2929_v57 = vunpack.i.h.bf16 %v2927_v50  ;;  %v2928_v58 = vunpack.i.l.bf16 %v2927_v50  ;;  %v2932_v60 = vpop.permute.xlu1 %2931 }
 0x242   : > { %v2934_v5 = vunpack.i.h.bf16 %v2932_v60  ;;  %v2933_v6 = vunpack.i.l.bf16 %v2932_v60 }
 0x243   : > { %v1672_v7 = vsel %vm1671_vm13, %v1663_v4, %v2928_v58  ;;  %v1673_v9 = vsel %vm1671_vm13, %v1664_v62, %v2929_v57 }
 0x244   : > { %v2947_v14 = vpop.permute.xlu0 %2946  ;;  %v1680_v16 = vpack.c.bf16 %v1673_v9, %v1672_v7  ;;  %v1657_v18 = vsel %vm1653_vm12, %v1648_v51, %v2934_v5  ;;  %v1656_v19 = vsel %vm1653_vm12, %v1647_v8, %v2933_v6 }
 0x245   : > { %v2937_v0 = vpop.permute.xlu1 %2936  ;;  %v2949_v20 = vunpack.i.h.bf16 %v2947_v14  ;;  %v2948_v21 = vunpack.i.l.bf16 %v2947_v14 }
 0x246   : > { %v2939_v17 = vunpack.i.h.bf16 %v2937_v0  ;;  %v2938_v11 = vunpack.i.l.bf16 %v2937_v0  ;;  %2624 = vmatprep.mubr.msk.bf16.mxu1 %vm1689_vm14, %v1680_v16 }
 0x248   : > { %v1665_v22 = vsel %vm1662_vm0, %v1656_v19, %v2938_v11  ;;  %v1666_v3 = vsel %vm1662_vm0, %v1657_v18, %v2939_v17  ;;  %v2952_v23 = vpop.permute.xlu0 %2951 }
 0x249   : > { %v2942_v24 = vpop.permute.xlu1 %2941  ;;  %v1674_v26 = vsel %vm1671_vm13, %v1665_v22, %v2948_v21  ;;  %v1675_v27 = vsel %vm1671_vm13, %v1666_v3, %v2949_v20  ;;  %v2954_v36 = vunpack.i.h.bf16 %v2952_v23  ;;  %v2953_v41 = vunpack.i.l.bf16 %v2952_v23 }
 0x24a   : > { %v1681_v28 = vpack.c.bf16 %v1675_v27, %v1674_v26  ;;  %v2944_v38 = vunpack.i.h.bf16 %v2942_v24  ;;  %v2943_v35 = vunpack.i.l.bf16 %v2942_v24 }
 0x24c   : > { %2625 = vmatmul.mubr.msk.bf16.vlgmr.msra.gmra.mrb[0].mxu1 %vm1689_vm14, %v1681_v28  ;;  %v2992_v1 = vpop.permute.xlu0 %2991  ;;  %v1616_v39 = vsel %vm1038_vm3, %v3858_v32, %v2943_v35  ;;  %v1617_v31 = vsel %vm1038_vm3, %v3932_v25, %v2944_v38 }
 0x24d   : > { %v2957_v30 = vpop.permute.xlu1 %2956  ;;  %v2994_v43 = vunpack.i.h.bf16 %v2992_v1  ;;  %v2993_v44 = vunpack.i.l.bf16 %v2992_v1  ;;  %v1624_v45 = vsel %vm1056_vm7, %v1616_v39, %v2953_v41  ;;  %v1625_v46 = vsel %vm1056_vm7, %v1617_v31, %v2954_v36 }
 0x24e   : > { %v2959_v57 = vunpack.i.h.bf16 %v2957_v30  ;;  %v2958_v9 = vunpack.i.l.bf16 %v2957_v30 }
 0x24f   : > { %v1633_v25 = vsel %vm1074_vm9, %v1625_v46, %v2994_v43  ;;  %v1632_v61 = vsel %vm1074_vm9, %v1624_v45, %v2993_v44 }
 0x250   : > { %v2997_v59 = vpop.permute.xlu0 %2996 }
 0x251   : > { %v4020_v34 = vpop.permute.xlu1 %2961  ;;  %v2999_v48 = vunpack.i.h.bf16 %v2997_v59  ;;  %v2998_v49 = vunpack.i.l.bf16 %v2997_v59 }
 0x252   : > { %v2964_v12 = vunpack.i.h.bf16 %v4020_v34  ;;  %v2963_v26 = vunpack.i.l.bf16 %v4020_v34 }
 0x253   : > { %v1640_v62 = vsel %vm1092_vm11, %v1632_v61, %v2998_v49  ;;  %v1641_v5 = vsel %vm1092_vm11, %v1633_v25, %v2999_v48 }
 0x254   : > { %v3002_v37 = vpop.permute.xlu0 %3001 }
 0x255   : > { %v4022_v15 = vpop.permute.xlu1 %2966  ;;  %v3004_v50 = vunpack.i.h.bf16 %v3002_v37  ;;  %v3003_v53 = vunpack.i.l.bf16 %v3002_v37 }
 0x256   : > { %v2969_v30 = vunpack.i.h.bf16 %v4022_v15  ;;  %v2968_v59 = vunpack.i.l.bf16 %v4022_v15 }
 0x257   : > { %v1649_v10 = vsel %vm1644_vm10, %v1640_v62, %v3003_v53  ;;  %v1650_v14 = vsel %vm1644_vm10, %v1641_v5, %v3004_v50 }
 0x258   : > { %v3007_v40 = vpop.permute.xlu0 %3006 }
 0x259   : > { %v2972_v42 = vpop.permute.xlu1 %2971  ;;  %v3009_v32 = vunpack.i.h.bf16 %v3007_v40  ;;  %v3008_v58 = vunpack.i.l.bf16 %v3007_v40 }
 0x25a   : > { %v2974_v35 = vunpack.i.h.bf16 %v2972_v42  ;;  %v2973_v37 = vunpack.i.l.bf16 %v2972_v42 }
 0x25b   : > { %v1658_v0 = vsel %vm1653_vm12, %v1649_v10, %v3008_v58  ;;  %v1659_v8 = vsel %vm1653_vm12, %v1650_v14, %v3009_v32  ;;  %v4074_v32 = vld [vmem:[%s4351_s8] ss:$0 sm:$0xff] }
 0x25c   : > { %v3012_v55 = vpop.permute.xlu0 %3011 }
 0x25d   : > { %v2977_v60 = vpop.permute.xlu1 %2976  ;;  %v3014_v63 = vunpack.i.h.bf16 %v3012_v55  ;;  %v3013_v4 = vunpack.i.l.bf16 %v3012_v55  ;;  %v4069_v55 = vld [vmem:[%s4350_s7] ss:$0 sm:$0xff] }
 0x25e   : > { %v2979_v6 = vunpack.i.h.bf16 %v2977_v60  ;;  %v2978_v7 = vunpack.i.l.bf16 %v2977_v60 }
 0x25f   : > { %v1667_v18 = vsel %vm1662_vm0, %v1658_v0, %v3013_v4  ;;  %v1668_v19 = vsel %vm1662_vm0, %v1659_v8, %v3014_v63 }
 0x260   : > { %v3017_v16 = vpop.permute.xlu0 %3016  ;;  %v1619_v22 = vsel %vm1038_vm3, %v3948_v2, %v2979_v6  ;;  %v1618_v3 = vsel %vm1038_vm3, %v3942_v52, %v2978_v7 }
 0x261   : > { %v3019_v51 = vunpack.i.h.bf16 %v3017_v16  ;;  %v3018_v17 = vunpack.i.l.bf16 %v3017_v16  ;;  %v2982_v11 = vpop.permute.xlu1 %2981 }
 0x262   : > { %v2984_v20 = vunpack.i.h.bf16 %v2982_v11  ;;  %v2983_v21 = vunpack.i.l.bf16 %v2982_v11 }
 0x263   : > { %v1676_v23 = vsel %vm1671_vm13, %v1667_v18, %v3018_v17  ;;  %v1677_v24 = vsel %vm1671_vm13, %v1668_v19, %v3019_v51 }
 0x264   : > { %v1682_v27 = vpack.c.bf16 %v1677_v24, %v1676_v23  ;;  %v1626_v28 = vsel %vm1056_vm7, %v1618_v3, %v2983_v21  ;;  %v1627_v1 = vsel %vm1056_vm7, %v1619_v22, %v2984_v20 }
 0x265   : > { %v1634_v2 = vsel %vm1074_vm9, %v1626_v28, %v2958_v9  ;;  %v1635_v38 = vsel %vm1074_vm9, %v1627_v1, %v2959_v57  ;;  %v2987_v52 = vpop.permute.xlu1 %2986 }
 0x266   : > { %v1642_v39 = vsel %vm1092_vm11, %v1634_v2, %v2963_v26  ;;  %v1643_v34 = vsel %vm1092_vm11, %v1635_v38, %v2964_v12  ;;  %2628 = vmatprep.mubr.msk.bf16.mxu1 %vm1689_vm14, %v1682_v27  ;;  %v2989_v31 = vunpack.i.h.bf16 %v2987_v52  ;;  %v2988_v40 = vunpack.i.l.bf16 %v2987_v52 }
 0x267   : > { %v1651_v36 = vsel %vm1644_vm10, %v1642_v39, %v2968_v59  ;;  %v1652_v41 = vsel %vm1644_vm10, %v1643_v34, %v2969_v30 }
 0x268   : > { %v1660_v15 = vsel %vm1653_vm12, %v1651_v36, %v2973_v37  ;;  %v1661_v43 = vsel %vm1653_vm12, %v1652_v41, %v2974_v35  ;;  %v2553_v35 = vld [vmem:[%s4349_s6 + $0x48] sm:$0xff]  ;;  %v2554_v37 = vld [vmem:[%s4349_s6 + $0x50] sm:$0xff]  ;;  %v2555_v36 = vld [vmem:[%s4349_s6 + $0x58] sm:$0xff] }
 0x269   : > { %v3022_v44 = vpop.permute.xlu1 %3021  ;;  %v1669_v42 = vsel %vm1662_vm0, %v1660_v15, %v2988_v40  ;;  %v1670_v48 = vsel %vm1662_vm0, %v1661_v43, %v2989_v31  ;;  %v2239_v39 = vpack.c.bf16 %v2554_v37, %v2553_v35  ;;  %v2556_v41 = vld [vmem:[%s4349_s6 + $0x60] sm:$0xff] }
 0x26a   : > { %v3024_v45 = vunpack.i.h.bf16 %v3022_v44  ;;  %v3023_v46 = vunpack.i.l.bf16 %v3022_v44  ;;  %v2240_v44 = vpack.c.bf16 %v2556_v41, %v2555_v36 }
 0x26b   : > { %2632 = vmatprep.subr.bf16.mxu0 %v2239_v39 }
 0x26c   : > { %v1678_v49 = vsel %vm1671_vm13, %v1669_v42, %v3023_v46  ;;  %v1679_v50 = vsel %vm1671_vm13, %v1670_v48, %v3024_v45  ;;  %2633 = vmatpush3.bf16.msra.mxu0 %v2239_v39  ;;  %v2557_v48 = vld [vmem:[%s4349_s6 + $0x68] sm:$0xff] }
 0x26d   : > { %v1683_v53 = vpack.c.bf16 %v1679_v50, %v1678_v49  ;;  %v2558_v49 = vld [vmem:[%s4349_s6 + $0x70] sm:$0xff]  ;;  %2634 = vmatprep.subr.bf16.mxu0 %v2240_v44 }
 0x26f   : > { %2629 = vmatmul.mubr.msk.bf16.gmra.mrb[4].mxu1 %vm1689_vm14, %v1683_v53 }
 0x270   : > { %2635 = vmatpush3.bf16.msra.mxu0 %v2240_v44 }
 0x31f   : > { %v2626_v57 = vpop.f32.mrb[0].mxu1 }
 0x320   : > { %v1780_v58 = vmul.f32 %v2626_v57, %v4069_v55  ;;  %v1740_v60 = vpop.f32.mrb[1].mxu1 }
 0x321   : > { %v1778_v25 = vmul.f32 %v4069_v55, %v1740_v60  ;;  %v2627_v61 = vpop.f32.mrb[2].mxu1 }
 0x322   : > { %v1795_v63 = vadd.f32 %v4074_v32, %v1780_v58  ;;  %v1781_v4 = vmul.f32 %v2627_v61, %v4069_v55  ;;  %v1743_v62 = vpop.f32.mrb[3].mxu1  ;;  %v2241_v58 = vpack.c.bf16 %v2558_v49, %v2557_v48 }
 0x323   : > { %v1793_v5 = vadd.f32 %v4074_v32, %v1778_v25  ;;  %v1779_v6 = vmul.f32 %v4069_v55, %v1743_v62 }
 0x324   : > { %vm1803_vm15 = vcmp.gt.f32.partialorder %v1795_v63, 0.0  ;;  %v1811_v7 = vmul.f32 0.01, %v1795_v63  ;;  %v1796_v9 = vadd.f32 %v4074_v32, %v1781_v4  ;;  %2636 = vmatprep.subr.bf16.mxu0 %v2241_v58 }
 0x325   : > { %vm1801_vm1 = vcmp.gt.f32.partialorder %v1793_v5, 0.0  ;;  %v1809_v12 = vmul.f32 0.01, %v1793_v5  ;;  %v1794_v10 = vadd.f32 %v4074_v32, %v1779_v6  ;;  %2637 = vmatpush3.bf16.msra.mxu0 %v2241_v58 }
 0x326   : > { %v1819_v14 = vsel %vm1803_vm15, %v1795_v63, %v1811_v7  ;;  %vm1804_vm2 = vcmp.gt.f32.partialorder %v1796_v9, 0.0  ;;  %v1812_v16 = vmul.f32 0.01, %v1796_v9 }
 0x327   : > { %1827 = vst.msk [vmem:[#allocation3 + $0x31] sm:$0xff] %vm1038_vm3, %v1819_v14  ;;  %v1817_v0 = vsel %vm1801_vm1, %v1793_v5, %v1809_v12  ;;  %vm1802_vm4 = vcmp.gt.f32.partialorder %v1794_v10, 0.0  ;;  %v1810_v8 = vmul.f32 0.01, %v1794_v10  ;;  %v2560_v12 = vld [vmem:[%s4349_s6 + $0x80] sm:$0xff] }
 0x328   : > { %1825 = vst.msk [vmem:[#allocation3 + $0x11] sm:$0xff] %vm1038_vm3, %v1817_v0  ;;  %v1820_v51 = vsel %vm1804_vm2, %v1796_v9, %v1812_v16  ;;  %v2559_v9 = vld [vmem:[%s4349_s6 + $0x78] sm:$0xff]  ;;  %v2561_v16 = vld [vmem:[%s4349_s6 + $0x88] sm:$0xff] }
 0x329   : > { %1828 = vst.msk [vmem:[#allocation3 + $0x41] sm:$0xff] %vm1038_vm3, %v1820_v51  ;;  %v1818_v17 = vsel %vm1802_vm4, %v1794_v10, %v1810_v8  ;;  %v2242_v10 = vpack.c.bf16 %v2560_v12, %v2559_v9  ;;  %v2243_v0 = vpack.c.bf16 %v2561_v16, %v2561_v16 }
 0x32a   : > { %1826 = vst.msk [vmem:[#allocation3 + $0x21] sm:$0xff] %vm1038_vm3, %v1818_v17 }
 0x32b   : > { %2638 = vmatprep.subr.bf16.mxu0 %v2242_v10  ;;  %v2257_v8 = vsel %vm1702_vm8, %v2243_v0, 0 }
 0x32c   : > { %2639 = vmatpush3.bf16.msra.mxu0 %v2242_v10 }
 0x32d   : > { %2652 = vmatprep.subr.msk.bf16.mxu0 %vm1702_vm8, %v2243_v0 }
 0x32e   : > { %v4089_v19 = vld [vmem:[#allocation3 + $0x30] sm:$0xff] }
 0x32f   : > { %v1852_v11 = vld [vmem:[#allocation3 + $0x11] sm:$0xff] }
 0x330   : > { %v3025_v18 = vpack.i.bf16 %v1852_v11, %v3853_v29  ;;  %v4091_v20 = vld [vmem:[#allocation3 + $0x40] sm:$0xff]  ;;  %v1860_v22 = vld [vmem:[#allocation3 + $0x12] sm:$0xff]  ;;  %2641 = vmatpush3.bf16.msra.mxu0 %v2257_v8 }
 0x331   : > { %v3035_v21 = vpack.i.bf16 %v4091_v20, %v4089_v19  ;;  %v4096_v3 = vld [vmem:[#allocation3 + $0x41] sm:$0xff]  ;;  %v3030_v23 = vpack.i.bf16 %v1860_v22, %v3862_v33  ;;  %v1877_v24 = vld [vmem:[#allocation3 + $0x31] sm:$0xff] }
 0x332   : > { %3026 = vrot.lane.b32.xlu0 %v3025_v18, %s3250_s14  ;;  %v3040_v26 = vpack.i.bf16 %v4096_v3, %v1877_v24  ;;  %v4101_v29 = vld [vmem:[#allocation3 + $0x20] sm:$0xff]  ;;  %v4107_v28 = vld [vmem:[#allocation3 + $0x10] sm:$0xff] }
 0x333   : > { %3036 = vrot.lane.b32.xlu1 %v3035_v21, %s4364_s22  ;;  %v4104_v27 = vld [vmem:[#allocation3 + $0x42] sm:$0xff]  ;;  %v3060_v1 = vpack.i.bf16 %v4101_v29, %v4107_v28  ;;  %v1885_v30 = vld [vmem:[#allocation3 + $0x32] sm:$0xff]  ;;  %v3075_v42 = vpack.i.bf16 %v4089_v19, %v4101_v29 }
 0x334   : > { %v3045_v59 = vpack.i.bf16 %v4104_v27, %v1885_v30  ;;  %v1876_v33 = vld [vmem:[#allocation3 + $0x21] sm:$0xff] }
 0x335   : > { %v3065_v2 = vpack.i.bf16 %v1876_v33, %v1852_v11  ;;  %v3050_v38 = vpack.i.bf16 %v1877_v24, %v1876_v33  ;;  %v1884_v52 = vld [vmem:[#allocation3 + $0x22] sm:$0xff] }
 0x336   : > { %3031 = vrot.lane.b32.xlu0 %v3030_v23, %s4363_s16  ;;  %v3070_v34 = vpack.i.bf16 %v1884_v52, %v1860_v22  ;;  %v3055_v31 = vpack.i.bf16 %v1885_v30, %v1884_v52 }
 0x337   : > { %3041 = vrot.lane.b32.xlu1 %v3040_v26, %s4359_s28 }
 0x33a   : > { %3061 = vrot.lane.b32.xlu0 %v3060_v1, %s4364_s22 }
 0x33b   : > { %3046 = vrot.lane.b32.xlu1 %v3045_v59, %s3258_s17 }
 0x33e   : > { %3066 = vrot.lane.b32.xlu0 %v3065_v2, %s4359_s28  ;;  %s4365_s28 = smov 64  }
 0x33f   : > { %3051 = vrot.lane.b32.xlu1 %v3050_v38, %s3250_s14 }
 0x342   : > { %3071 = vrot.lane.b32.xlu0 %v3070_v34, %s3258_s17  ;;  %v2630_v40 = vpop.f32.mrb[4].mxu1 }
 0x343   : > { %v1784_v15 = vmul.f32 %v2630_v40, %v4069_v55  ;;  %3056 = vrot.lane.b32.xlu1 %v3055_v31, %s4363_s16  ;;  %v1756_v43 = vpop.f32.mrb[5].mxu1 }
 0x344   : > { %v1782_v45 = vmul.f32 %v4069_v55, %v1756_v43  ;;  %v2631_v46 = vpop.f32.mrb[6].mxu1 }
 0x345   : > { %v1799_v50 = vadd.f32 %v4074_v32, %v1784_v15  ;;  %v1785_v53 = vmul.f32 %v2631_v46, %v4069_v55  ;;  %v1759_v57 = vpop.f32.mrb[7].mxu1 }
 0x346   : > { %v1797_v60 = vadd.f32 %v4074_v32, %v1782_v45  ;;  %v1783_v25 = vmul.f32 %v4069_v55, %v1759_v57  ;;  %3076 = vrot.lane.b32.xlu0 %v3075_v42, %s3259_s24 }
 0x347   : > { %vm1807_vm5 = vcmp.gt.f32.partialorder %v1799_v50, 0.0  ;;  %v1815_v61 = vmul.f32 0.01, %v1799_v50  ;;  %v1800_v63 = vadd.f32 %v4074_v32, %v1785_v53 }
 0x348   : > { %vm1805_vm6 = vcmp.gt.f32.partialorder %v1797_v60, 0.0  ;;  %v1813_v4 = vmul.f32 0.01, %v1797_v60  ;;  %v1798_v62 = vadd.f32 %v4074_v32, %v1783_v25 }
 0x349   : > { %v1823_v5 = vsel %vm1807_vm5, %v1799_v50, %v1815_v61  ;;  %vm1808_vm15 = vcmp.gt.f32.partialorder %v1800_v63, 0.0  ;;  %v1816_v6 = vmul.f32 0.01, %v1800_v63 }
 0x34a   : > { %1831 = vst.msk [vmem:[#allocation3 + $0x71] sm:$0xff] %vm1038_vm3, %v1823_v5  ;;  %v1821_v7 = vsel %vm1805_vm6, %v1797_v60, %v1813_v4  ;;  %vm1806_vm1 = vcmp.gt.f32.partialorder %v1798_v62, 0.0  ;;  %v1814_v55 = vmul.f32 0.01, %v1798_v62  ;;  %3081 = vrot.lane.b32.xlu0 %v3050_v38, %s3260_s26 }
 0x34b   : > { %1829 = vst.msk [vmem:[#allocation3 + $0x51] sm:$0xff] %vm1038_vm3, %v1821_v7  ;;  %v1824_v32 = vsel %vm1808_vm15, %v1800_v63, %v1816_v6 }
 0x34c   : > { %1832 = vst.msk [vmem:[#allocation3 + $0x81] sm:$0xff] %vm1038_vm3, %v1824_v32  ;;  %v1822_v14 = vsel %vm1806_vm1, %v1798_v62, %v1814_v55 }
 0x34d   : > { %1830 = vst.msk [vmem:[#allocation3 + $0x61] sm:$0xff] %vm1038_vm3, %v1822_v14 }
 0x34e   : > { %3086 = vrot.lane.b32.xlu0 %v3055_v31, %s4365_s28 }
 0x351   : > { %v4180_v1 = vld [vmem:[#allocation3 + $0x70] sm:$0xff] }
 0x352   : > { %v1910_v51 = vld [vmem:[#allocation3 + $0x52] sm:$0xff] }
 0x353   : > { %v4164_v17 = vld [vmem:[#allocation3 + $0x50] sm:$0xff]  ;;  %v3105_v11 = vpack.i.bf16 %v1910_v51, %v4104_v27  ;;  %v1874_v26 = vld [vmem:[#allocation3 + $0x80] sm:$0xff] }
 0x354   : > { %v3090_v18 = vpack.i.bf16 %v4164_v17, %v4091_v20  ;;  %v1902_v21 = vld [vmem:[#allocation3 + $0x51] sm:$0xff]  ;;  %v4172_v23 = vld [vmem:[#allocation3 + $0x60] sm:$0xff]  ;;  %v3115_v30 = vpack.i.bf16 %v1874_v26, %v4180_v1  ;;  %v3130_v31 = vpack.i.bf16 %v3956_v47, %v1874_v26 }
 0x355   : > { %3106 = vrot.lane.b32.xlu0 %v3105_v11, %s4365_s28  ;;  %v3095_v22 = vpack.i.bf16 %v1902_v21, %v4096_v3  ;;  %v3150_v24 = vpack.i.bf16 %v4172_v23, %v4164_v17  ;;  %v1880_v27 = vld [vmem:[#allocation3 + $0x61] sm:$0xff]  ;;  %v1881_v2 = vld [vmem:[#allocation3 + $0x71] sm:$0xff]  ;;  %v3165_v34 = vpack.i.bf16 %v4180_v1, %v4172_v23 }
 0x356   : > { %3091 = vrot.lane.b32.xlu1 %v3090_v18, %s3259_s24  ;;  %v3155_v3 = vpack.i.bf16 %v1880_v27, %v1902_v21  ;;  %v1882_v59 = vld [vmem:[#allocation3 + $0x81] sm:$0xff]  ;;  %v1889_v37 = vld [vmem:[#allocation3 + $0x72] sm:$0xff]  ;;  %v3170_v40 = vpack.i.bf16 %v1881_v2, %v1880_v27 }
 0x357   : > { %v1888_v33 = vld [vmem:[#allocation3 + $0x62] sm:$0xff]  ;;  %v3120_v38 = vpack.i.bf16 %v1882_v59, %v1881_v2  ;;  %v3145_v41 = vpack.i.bf16 %v3967_v54, %v1882_v59 }
 0x358   : > { %v3160_v52 = vpack.i.bf16 %v1888_v33, %v1910_v51  ;;  %v1890_v35 = vld [vmem:[#allocation3 + $0x82] sm:$0xff]  ;;  %v3175_v36 = vpack.i.bf16 %v1889_v37, %v1888_v33 }
 0x359   : > { %3111 = vrot.lane.b32.xlu0 %v3105_v11, %s4363_s16  ;;  %v3125_v39 = vpack.i.bf16 %v1890_v35, %v1889_v37  ;;  %v3180_v15 = vpack.i.bf16 %v3971_v56, %v1890_v35 }
 0x35a   : > { %3096 = vrot.lane.b32.xlu1 %v3095_v22, %s3260_s26 }
 0x35d   : > { %3151 = vrot.lane.b32.xlu0 %v3150_v24, %s4364_s22 }
 0x35e   : > { %3101 = vrot.lane.b32.xlu1 %v3095_v22, %s3250_s14 }
 0x361   : > { %3156 = vrot.lane.b32.xlu0 %v3155_v3, %s4366_s27 }
 0x362   : > { %3116 = vrot.lane.b32.xlu1 %v3115_v30, %s4364_s22 }
 0x365   : > { %3161 = vrot.lane.b32.xlu0 %v3160_v52, %s3258_s17 }
 0x366   : > { %3121 = vrot.lane.b32.xlu1 %v3120_v38, %s4366_s27  ;;  %s4300_s27 = scalar_lea.hbm %s4352_s9, %s2571_s21 }
 0x369   : > { %3166 = vrot.lane.b32.xlu0 %v3165_v34, %s3259_s24 }
 0x36a   : > { %3126 = vrot.lane.b32.xlu1 %v3125_v39, %s3258_s17  ;;  %s3189_s17 = sshll.u32 %s3262_s13, 4  ;;  %s3190_s17 = int_to_ptr.vmem [resolvable:$false] %s3189_s17 }
 0x36d   : > { %3171 = vrot.lane.b32.xlu0 %v3170_v40, %s3260_s26 }
 0x36e   : > { %3131 = vrot.lane.b32.xlu1 %v3130_v31, %s3259_s24  ;;  %s3191_s24 = scalar_lea.vmem %s3190_s17, 256 }
 0x371   : > { %3176 = vrot.lane.b32.xlu0 %v3175_v36, %s4365_s28 }
 0x372   : > { %3136 = vrot.lane.b32.xlu1 %v3170_v40, %s3250_s14 }
 0x376   : > { %3141 = vrot.lane.b32.xlu1 %v3175_v36, %s4363_s16 }
 0x37a   : > { %3146 = vrot.lane.b32.xlu1 %v3145_v41, %s3260_s26  ;;  %s323_s26 = sand.u32 1, %s3239_s10  }
 0x37b   : > { %s2536_s22 = sshll.u32 %s323_s26, 3  ;;  %s2414_s14 = scalar_lea.sflag [#allocation5], %s323_s26 }
 0x37c   : > { %s325_s25 = scalar_lea.vmem [#allocation4], %s2536_s22 }
 0x37e   : > { %3181 = vrot.lane.b32.xlu1 %v3180_v15, %s4365_s28  ;;  %s2427_s28 = sshll.u32 %s325_s25, 4  ;;  %s4302_s28 = int_to_ptr.vmem [resolvable:$true] %s2427_s28 }
 0x37f   : > { %s3185_s16 = scalar_lea.vmem %s4302_s28, 128  ;;  %p3192_p0 = scmp.lt.s32.totalorder %s4302_s28, %s3190_s17 }
 0x380   : > { %p3186_p11 = scmp.ne.s32.totalorder %s4302_s28, %s3185_s16  ;;  %p3193_p1 = scmp.lt.s32.totalorder %s3191_s24, %s3185_s16 }
 0x382   : > { %p3187_p12 = pnand %p3186_p11, %p3351_p5  ;;  %p3194_p2 = por %p3193_p1, %p3192_p0 }
 0x384   : > { %p3188_p13 = pneg %p3187_p12 }
 0x386   : > { %p3195_p3 = pnand %p3194_p2, %p3188_p13 }
 0x3a4   : > { %v3027_v47 = vpop.permute.xlu0 %3026 }
 0x3a5   : > { %v3037_v43 = vpop.permute.xlu1 %3036  ;;  %v3029_v53 = vunpack.i.h.bf16 %v3027_v47  ;;  %v3028_v57 = vunpack.i.l.bf16 %v3027_v47 }
 0x3a6   : > { %v3039_v31 = vunpack.i.h.bf16 %v3037_v43  ;;  %v3038_v40 = vunpack.i.l.bf16 %v3037_v43 }
 0x3a7   : > { %v2172_v61 = vsel %vm1038_vm3, %v4107_v28, %v3029_v53  ;;  %v2171_v63 = vsel %vm1038_vm3, %v3978_v13, %v3028_v57 }
 0x3a8   : > { %v3032_v44 = vpop.permute.xlu0 %3031 }
 0x3a9   : > { %v4201_v45 = vpop.permute.xlu1 %3041  ;;  %v3034_v54 = vunpack.i.h.bf16 %v3032_v44  ;;  %v3033_v58 = vunpack.i.l.bf16 %v3032_v44 }
 0x3aa   : > { %v3043_v15 = vunpack.i.l.bf16 %v4201_v45 }
 0x3ab   : > { %v2179_v5 = vsel %vm1056_vm7, %v2171_v63, %v3033_v58  ;;  %v2180_v6 = vsel %vm1056_vm7, %v2172_v61, %v3034_v54 }
 0x3ac   : > { %v3062_v46 = vpop.permute.xlu0 %3061 }
 0x3ad   : > { %v4203_v42 = vpop.permute.xlu1 %3046  ;;  %v3064_v25 = vunpack.i.h.bf16 %v3062_v46  ;;  %v3063_v56 = vunpack.i.l.bf16 %v3062_v46 }
 0x3ae   : > { %v3049_v43 = vunpack.i.h.bf16 %v4203_v42  ;;  %v3048_v53 = vunpack.i.l.bf16 %v4203_v42 }
 0x3af   : > { %v2187_v32 = vsel %vm1074_vm9, %v2179_v5, %v3063_v56  ;;  %v2188_v10 = vsel %vm1074_vm9, %v2180_v6, %v3064_v25 }
 0x3b0   : > { %v3067_v48 = vpop.permute.xlu0 %3066 }
 0x3b1   : > { %v3052_v50 = vpop.permute.xlu1 %3051  ;;  %v3069_v4 = vunpack.i.h.bf16 %v3067_v48  ;;  %v3068_v62 = vunpack.i.l.bf16 %v3067_v48 }
 0x3b2   : > { %v3054_v28 = vunpack.i.h.bf16 %v3052_v50  ;;  %v3053_v0 = vunpack.i.l.bf16 %v3052_v50 }
 0x3b3   : > { %v2195_v51 = vsel %vm1092_vm11, %v2187_v32, %v3068_v62  ;;  %v2196_v11 = vsel %vm1092_vm11, %v2188_v10, %v3069_v4 }
 0x3b4   : > { %v3072_v49 = vpop.permute.xlu0 %3071  ;;  %v2174_v33 = vsel %vm1038_vm3, %v4089_v19, %v3054_v28  ;;  %v2173_v2 = vsel %vm1038_vm3, %v4101_v29, %v3053_v0  ;;  %v3044_v29 = vunpack.i.h.bf16 %v4201_v45 }
 0x3b5   : > { %v3074_v7 = vunpack.i.h.bf16 %v3072_v49  ;;  %v3073_v55 = vunpack.i.l.bf16 %v3072_v49  ;;  %v3057_v9 = vpop.permute.xlu1 %3056 }
 0x3b6   : > { %v3059_v18 = vunpack.i.h.bf16 %v3057_v9  ;;  %v3058_v21 = vunpack.i.l.bf16 %v3057_v9 }
 0x3b7   : > { %v2203_v22 = vsel %vm1644_vm10, %v2195_v51, %v3073_v55  ;;  %v2204_v24 = vsel %vm1644_vm10, %v2196_v11, %v3074_v7 }
 0x3b8   : > { %v3077_v60 = vpop.permute.xlu0 %3076  ;;  %v2181_v35 = vsel %vm1056_vm7, %v2173_v2, %v3058_v21  ;;  %v2182_v37 = vsel %vm1056_vm7, %v2174_v33, %v3059_v18 }
 0x3b9   : > { %v3079_v14 = vunpack.i.h.bf16 %v3077_v60  ;;  %v3078_v16 = vunpack.i.l.bf16 %v3077_v60  ;;  %v2189_v19 = vsel %vm1074_vm9, %v2181_v35, %v3038_v40  ;;  %v2190_v41 = vsel %vm1074_vm9, %v2182_v37, %v3039_v31 }
 0x3ba   : > { %v2197_v46 = vsel %vm1092_vm11, %v2189_v19, %v3043_v15  ;;  %v2198_v48 = vsel %vm1092_vm11, %v2190_v41, %v3044_v29 }
 0x3bb   : > { %v2211_v27 = vsel %vm1653_vm12, %v2203_v22, %v3078_v16  ;;  %v2212_v30 = vsel %vm1653_vm12, %v2204_v24, %v3079_v14  ;;  %v2205_v58 = vsel %vm1644_vm10, %v2197_v46, %v3048_v53  ;;  %v2206_v60 = vsel %vm1644_vm10, %v2198_v48, %v3049_v43 }
 0x3bc   : > { %v3082_v12 = vpop.permute.xlu0 %3081 }
 0x3bd   : > { %v3084_v8 = vunpack.i.h.bf16 %v3082_v12  ;;  %v3083_v13 = vunpack.i.l.bf16 %v3082_v12 }
 0x3bf   : > { %v2219_v38 = vsel %vm1662_vm0, %v2211_v27, %v3083_v13  ;;  %v2220_v52 = vsel %vm1662_vm0, %v2212_v30, %v3084_v8 }
 0x3c0   : > { %v3087_v26 = vpop.permute.xlu0 %3086 }
 0x3c1   : > { %v3089_v3 = vunpack.i.h.bf16 %v3087_v26  ;;  %v3088_v59 = vunpack.i.l.bf16 %v3087_v26 }
 0x3c3   : > { %v2227_v39 = vsel %vm1671_vm13, %v2219_v38, %v3088_v59  ;;  %v2228_v34 = vsel %vm1671_vm13, %v2220_v52, %v3089_v3 }
 0x3c4   : > { %v2235_v36 = vpack.c.bf16 %v2228_v34, %v2227_v39 }
 0x3c6   : > { %2642 = vmatprep.mubr.msk.bf16.mxu0 %vm1689_vm14, %v2235_v36 }
 0x3c7   : > { %v3107_v47 = vpop.permute.xlu0 %3106 }
 0x3c8   : > { %v3092_v44 = vpop.permute.xlu1 %3091  ;;  %v3109_v56 = vunpack.i.h.bf16 %v3107_v47  ;;  %v3108_v61 = vunpack.i.l.bf16 %v3107_v47 }
 0x3c9   : > { %v3094_v49 = vunpack.i.h.bf16 %v3092_v44  ;;  %v3093_v50 = vunpack.i.l.bf16 %v3092_v44 }
 0x3cb   : > { %v3112_v54 = vpop.permute.xlu0 %3111  ;;  %v2214_v63 = vsel %vm1653_vm12, %v2206_v60, %v3094_v49  ;;  %v2213_v4 = vsel %vm1653_vm12, %v2205_v58, %v3093_v50 }
 0x3cc   : > { %v3097_v57 = vpop.permute.xlu1 %3096  ;;  %v3114_v13 = vunpack.i.h.bf16 %v3112_v54  ;;  %v3113_v51 = vunpack.i.l.bf16 %v3112_v54 }
 0x3cd   : > { %v3099_v25 = vunpack.i.h.bf16 %v3097_v57  ;;  %v3098_v45 = vunpack.i.l.bf16 %v3097_v57 }
 0x3cf   : > { %v2221_v62 = vsel %vm1662_vm0, %v2213_v4, %v3098_v45  ;;  %v2222_v5 = vsel %vm1662_vm0, %v2214_v63, %v3099_v25  ;;  %v3152_v55 = vpop.permute.xlu0 %3151 }
 0x3d0   : > { %v2229_v42 = vsel %vm1671_vm13, %v2221_v62, %v3108_v61  ;;  %v2230_v6 = vsel %vm1671_vm13, %v2222_v5, %v3109_v56  ;;  %v3102_v7 = vpop.permute.xlu1 %3101  ;;  %v3154_v24 = vunpack.i.h.bf16 %v3152_v55  ;;  %v3153_v26 = vunpack.i.l.bf16 %v3152_v55 }
 0x3d1   : > { %v2236_v9 = vpack.c.bf16 %v2230_v6, %v2229_v42  ;;  %v3104_v10 = vunpack.i.h.bf16 %v3102_v7  ;;  %v3103_v14 = vunpack.i.l.bf16 %v3102_v7 }
 0x3d3   : > { %2643 = vmatmul.mubr.msk.bf16.vlgmr.msra.gmra.mrb[8].mxu0 %vm1689_vm14, %v2236_v9  ;;  %v3157_v32 = vpop.permute.xlu0 %3156  ;;  %v2175_v0 = vsel %vm1038_vm3, %v4091_v20, %v3103_v14  ;;  %v2176_v8 = vsel %vm1038_vm3, %v4164_v17, %v3104_v10 }
 0x3d4   : > { %v3117_v12 = vpop.permute.xlu1 %3116  ;;  %v2183_v21 = vsel %vm1056_vm7, %v2175_v0, %v3113_v51  ;;  %v2184_v22 = vsel %vm1056_vm7, %v2176_v8, %v3114_v13  ;;  %v3159_v27 = vunpack.i.h.bf16 %v3157_v32  ;;  %v3158_v30 = vunpack.i.l.bf16 %v3157_v32 }
 0x3d5   : > { %v2192_v3 = vsel %vm1074_vm9, %v2184_v22, %v3154_v24  ;;  %v2191_v59 = vsel %vm1074_vm9, %v2183_v21, %v3153_v26  ;;  %v3119_v60 = vunpack.i.h.bf16 %v3117_v12  ;;  %v3118_v25 = vunpack.i.l.bf16 %v3117_v12  ;;  %v2567_v26 = vld [vmem:[%s4350_s7 + $0x1] ss:$0 sm:$0xff] }
 0x3d6   : > { %v2199_v39 = vsel %vm1092_vm11, %v2191_v59, %v3158_v30  ;;  %v2200_v34 = vsel %vm1092_vm11, %v2192_v3, %v3159_v27  ;;  %v2569_v30 = vld [vmem:[%s4351_s8 + $0x1] ss:$0 sm:$0xff] }
 0x3d7   : > { %v3162_v28 = vpop.permute.xlu0 %3161 }
 0x3d8   : > { %v4247_v16 = vpop.permute.xlu1 %3121  ;;  %v3164_v20 = vunpack.i.h.bf16 %v3162_v28  ;;  %v3163_v33 = vunpack.i.l.bf16 %v3162_v28 }
 0x3d9   : > { %v3124_v61 = vunpack.i.h.bf16 %v4247_v16  ;;  %v3123_v63 = vunpack.i.l.bf16 %v4247_v16 }
 0x3da   : > { %v2207_v31 = vsel %vm1644_vm10, %v2199_v39, %v3163_v33  ;;  %v2208_v40 = vsel %vm1644_vm10, %v2200_v34, %v3164_v20 }
 0x3db   : > { %v3167_v18 = vpop.permute.xlu0 %3166 }
 0x3dc   : > { %v3127_v11 = vpop.permute.xlu1 %3126  ;;  %v3169_v38 = vunpack.i.h.bf16 %v3167_v18  ;;  %v3168_v52 = vunpack.i.l.bf16 %v3167_v18 }
 0x3dd   : > { %v3129_v5 = vunpack.i.h.bf16 %v3127_v11  ;;  %v3128_v42 = vunpack.i.l.bf16 %v3127_v11 }
 0x3de   : > { %v2215_v41 = vsel %vm1653_vm12, %v2207_v31, %v3168_v52  ;;  %v2216_v29 = vsel %vm1653_vm12, %v2208_v40, %v3169_v38 }
 0x3df   : > { %v3172_v17 = vpop.permute.xlu0 %3171 }
 0x3e0   : > { %v3132_v2 = vpop.permute.xlu1 %3131  ;;  %v3174_v35 = vunpack.i.h.bf16 %v3172_v17  ;;  %v3173_v37 = vunpack.i.l.bf16 %v3172_v17 }
 0x3e1   : > { %v3134_v55 = vunpack.i.h.bf16 %v3132_v2  ;;  %v3133_v9 = vunpack.i.l.bf16 %v3132_v2 }
 0x3e2   : > { %v2223_v44 = vsel %vm1662_vm0, %v2215_v41, %v3173_v37  ;;  %v2224_v46 = vsel %vm1662_vm0, %v2216_v29, %v3174_v35 }
 0x3e3   : > { %v3177_v36 = vpop.permute.xlu0 %3176 }
 0x3e4   : > { %v3137_v19 = vpop.permute.xlu1 %3136  ;;  %v3179_v15 = vunpack.i.h.bf16 %v3177_v36  ;;  %v3178_v47 = vunpack.i.l.bf16 %v3177_v36 }
 0x3e5   : > { %v3139_v48 = vunpack.i.h.bf16 %v3137_v19  ;;  %v3138_v49 = vunpack.i.l.bf16 %v3137_v19 }
 0x3e6   : > { %v2231_v50 = vsel %vm1671_vm13, %v2223_v44, %v3178_v47  ;;  %v2232_v43 = vsel %vm1671_vm13, %v2224_v46, %v3179_v15 }
 0x3e7   : > { %v2237_v53 = vpack.c.bf16 %v2232_v43, %v2231_v50  ;;  %v2178_v45 = vsel %vm1038_vm3, %v4180_v1, %v3139_v48  ;;  %v2177_v56 = vsel %vm1038_vm3, %v4172_v23, %v3138_v49 }
 0x3e8   : > { %v3142_v57 = vpop.permute.xlu1 %3141 }
 0x3e9   : > { %v3144_v54 = vunpack.i.h.bf16 %v3142_v57  ;;  %v3143_v58 = vunpack.i.l.bf16 %v3142_v57  ;;  %2646 = vmatprep.mubr.msk.bf16.mxu0 %vm1689_vm14, %v2237_v53 }
 0x3eb   : > { %v2185_v4 = vsel %vm1056_vm7, %v2177_v56, %v3143_v58  ;;  %v2186_v62 = vsel %vm1056_vm7, %v2178_v45, %v3144_v54 }
 0x3ec   : > { %v2193_v6 = vsel %vm1074_vm9, %v2185_v4, %v3118_v25  ;;  %v2194_v7 = vsel %vm1074_vm9, %v2186_v62, %v3119_v60  ;;  %v3147_v1 = vpop.permute.xlu1 %3146 }
 0x3ed   : > { %v2201_v23 = vsel %vm1092_vm11, %v2193_v6, %v3123_v63  ;;  %v2202_v12 = vsel %vm1092_vm11, %v2194_v7, %v3124_v61  ;;  %v3149_v32 = vunpack.i.h.bf16 %v3147_v1  ;;  %v3148_v10 = vunpack.i.l.bf16 %v3147_v1 }
 0x3ee   : > { %v2209_v14 = vsel %vm1644_vm10, %v2201_v23, %v3128_v42  ;;  %v2210_v16 = vsel %vm1644_vm10, %v2202_v12, %v3129_v5 }
 0x3ef   : > { %v2217_v28 = vsel %vm1653_vm12, %v2209_v14, %v3133_v9  ;;  %v2218_v0 = vsel %vm1653_vm12, %v2210_v16, %v3134_v55 }
 0x3f0   : > { %v3182_v8 = vpop.permute.xlu1 %3181  ;;  %v2225_v11 = vsel %vm1662_vm0, %v2217_v28, %v3148_v10  ;;  %v2226_v18 = vsel %vm1662_vm0, %v2218_v0, %v3149_v32 }
 0x3f1   : > { %v3184_v13 = vunpack.i.h.bf16 %v3182_v8  ;;  %v3183_v51 = vunpack.i.l.bf16 %v3182_v8 }
 0x3f3   : > { %v2233_v21 = vsel %vm1671_vm13, %v2225_v11, %v3183_v51  ;;  %v2234_v22 = vsel %vm1671_vm13, %v2226_v18, %v3184_v13 }
 0x3f4   : > { %v2238_v24 = vpack.c.bf16 %v2234_v22, %v2233_v21 }
 0x3f6   : > { %2647 = vmatmul.mubr.msk.bf16.gmra.mrb[12].mxu0 %vm1689_vm14, %v2238_v24 }
 0x4a6   : > { %v2644_v27 = vpop.f32.mrb[8].mxu0 }
 0x4a7   : > { %v2293_v3 = vpop.f32.mrb[9].mxu0  ;;  %v2334_v2 = vmul.f32 %v2644_v27, %v2567_v26 }
 0x4a8   : > { %v2332_v59 = vmul.f32 %v2567_v26, %v2293_v3  ;;  %v2645_v20 = vpop.f32.mrb[10].mxu0 }
 0x4a9   : > { %v2296_v33 = vpop.f32.mrb[11].mxu0  ;;  %v2350_v37 = vadd.f32 %v2569_v30, %v2334_v2  ;;  %v2335_v39 = vmul.f32 %v2645_v20, %v2567_v26 }
 0x4aa   : > { %v2348_v17 = vadd.f32 %v2569_v30, %v2332_v59  ;;  %v2333_v38 = vmul.f32 %v2567_v26, %v2296_v33 }
 0x4ab   : > { %v2351_v40 = vadd.f32 %v2569_v30, %v2335_v39  ;;  %v2366_v19 = vmul.f32 0.01, %v2350_v37  ;;  %vm2358_vm9 = vcmp.gt.f32.partialorder %v2350_v37, 0.0 }
 0x4ac   : > { %v2349_v52 = vadd.f32 %v2569_v30, %v2333_v38  ;;  %vm2356_vm3 = vcmp.gt.f32.partialorder %v2348_v17, 0.0  ;;  %v2364_v35 = vmul.f32 0.01, %v2348_v17 }
 0x4ad   : > { %v2374_v41 = vsel %vm2358_vm9, %v2350_v37, %v2366_v19  ;;  %v2367_v29 = vmul.f32 0.01, %v2351_v40  ;;  %vm2359_vm11 = vcmp.gt.f32.partialorder %v2351_v40, 0.0 }
 0x4ae   : > { %v2372_v34 = vsel %vm2356_vm3, %v2348_v17, %v2364_v35  ;;  %v2365_v31 = vmul.f32 0.01, %v2349_v52  ;;  %vm2357_vm7 = vcmp.gt.f32.partialorder %v2349_v52, 0.0 }
 0x4af   : > { %2380 = vxpose.xlu0.b32.start [1/8] (short) (narrow) %v2372_v34, 8  ;;  %v2375_v15 = vsel %vm2359_vm11, %v2351_v40, %v2367_v29 }
 0x4b0   : > { %v2373_v36 = vsel %vm2357_vm7, %v2349_v52, %v2365_v31 }
 0x4b3   : > { %2381 = vxpose.xlu0.b32.cont [2/8] (short) (narrow) %v2373_v36, 8 }
 0x4b7   : > { %2382 = vxpose.xlu0.b32.cont [3/8] (short) (narrow) %v2374_v41, 8 }
 0x4bb   : > { %2383 = vxpose.xlu0.b32.cont [4/8] (short) (narrow) %v2375_v15, 8 }
 0x4c9   : > { %v2648_v47 = vpop.f32.mrb[12].mxu0 }
 0x4ca   : > { %v2309_v44 = vpop.f32.mrb[13].mxu0  ;;  %v2338_v50 = vmul.f32 %v2648_v47, %v2567_v26 }
 0x4cb   : > { %v2336_v46 = vmul.f32 %v2567_v26, %v2309_v44  ;;  %v2649_v48 = vpop.f32.mrb[14].mxu0 }
 0x4cc   : > { %v2312_v49 = vpop.f32.mrb[15].mxu0  ;;  %v2354_v58 = vadd.f32 %v2569_v30, %v2338_v50  ;;  %v2339_v60 = vmul.f32 %v2649_v48, %v2567_v26 }
 0x4cd   : > { %v2352_v43 = vadd.f32 %v2569_v30, %v2336_v46  ;;  %v2337_v53 = vmul.f32 %v2567_v26, %v2312_v49 }
 0x4ce   : > { %v2355_v56 = vadd.f32 %v2569_v30, %v2339_v60  ;;  %v2370_v63 = vmul.f32 0.01, %v2354_v58  ;;  %vm2362_vm12 = vcmp.gt.f32.partialorder %v2354_v58, 0.0 }
 0x4cf   : > { %v2353_v57 = vadd.f32 %v2569_v30, %v2337_v53  ;;  %vm2360_vm8 = vcmp.gt.f32.partialorder %v2352_v43, 0.0  ;;  %v2368_v54 = vmul.f32 0.01, %v2352_v43 }
 0x4d0   : > { %v2378_v4 = vsel %vm2362_vm12, %v2354_v58, %v2370_v63  ;;  %v2371_v62 = vmul.f32 0.01, %v2355_v56  ;;  %vm2363_vm0 = vcmp.gt.f32.partialorder %v2355_v56, 0.0 }
 0x4d1   : > { %v2376_v25 = vsel %vm2360_vm8, %v2352_v43, %v2368_v54  ;;  %v2369_v45 = vmul.f32 0.01, %v2353_v57  ;;  %vm2361_vm10 = vcmp.gt.f32.partialorder %v2353_v57, 0.0 }
 0x4d2   : > { %2384 = vxpose.xlu0.b32.cont [5/8] (short) (narrow) %v2376_v25, 8  ;;  %v2379_v5 = vsel %vm2363_vm0, %v2355_v56, %v2371_v62 }
 0x4d3   : > { %v2377_v61 = vsel %vm2361_vm10, %v2353_v57, %v2369_v45 }
 0x4d6   : > { %2385 = vxpose.xlu0.b32.cont [6/8] (short) (narrow) %v2377_v61, 8 }
 0x4da   : > { %2386 = vxpose.xlu0.b32.cont [7/8] (short) (narrow) %v2378_v4, 8 }
 0x4de   : > { %2387 = vxpose.xlu0.b32.end [8/8] (short) (narrow) %v2379_v5, 8 }
 0x542   : > { %v2396_v42 = vpop.trf.xlu0 }
 0x543   : > { %2412 = vst.msk [vmem:[%s325_s25] sm:$0xff] %vm1671_vm13, %v2396_v42 }
 0x544   : > { %3198 = shalt.err (!%p3195_p3)
}
 0x545   : > { %s3199_s26 = scalar_lea.hbm %s4300_s27, 128  ;;  %s3203_s25 = scalar_lea.hbm %s4352_s9, 256 }
 0x546   : > { %p3200_p4 = scmp.ne.s32.totalorder %s4300_s27, %s3199_s26  ;;  %p3204_p9 = scmp.lt.u32.totalorder %s4300_s27, %s4352_s9 }
 0x547   : > { %p3205_p10 = scmp.lt.u32.totalorder %s3203_s25, %s3199_s26  ;;  %p3207_p12 = scmp.lt.u32.totalorder %s3199_s26, %s4300_s27 }
 0x548   : > { %p3201_p7 = pnand %p3200_p4, %p3351_p5 }
 0x549   : > { %p3206_p11 = por %p3205_p10, %p3204_p9 }
 0x54a   : > { %p3202_p8 = pneg %p3201_p7 }
 0x54b   : > { %p3208_p13 = por %p3207_p12, %p3206_p11 }
 0x54d   : > { %p3209_p0 = pnand %p3208_p13, %p3202_p8 }
 0x54f   : > { %3212 = shalt.err (!%p3209_p0)
}
 0x550   : > { %2653 = dma.vmem_to_hbm [thread:$0]  (%p3351_p5), %s4302_s28, 128, %s4300_s27, %s2414_s14  }
 0x551 PF: > { %p2659_p1 = scmp.ge.s32.totalorder %s3247_s12, 2  ;;  %s2439_s16 = sand.u32 1, %s3235_s30  }
 0x552   : > { %s2440_s13 = scalar_lea.sflag [#allocation5], %s2439_s16 }
 0x553   : > { %p2656_p2 = pnand %p2659_p1, %p3355_p6 }
 0x555   : > { %3230 = dma.done.wait (!%p2656_p2), %s2440_s13, 128  }
 0x556   : > { %3232 = vsyncadd (!%p2656_p2), %s2440_s13, 4294967168  ;;  %p19_p3 = scmp.ge.s32.totalorder %s3338_s15, 4   ;;  %s4367_s30 = smov %s3239_s10 }
 0x557   : > { %s4368_s10 = smov %s3243_s11  ;;  %s4369_s11 = smov %s3349_s18 }
 0x558   : > { %s4370_s12 = smov %s3338_s15  ;;  %21 = sbr.rel (!%p19_p3) target bundleno = 3 (0x3), region = 167 }
 0x55f   :  { %2445 = vsyncpa [#allocation5], 1 }
 0x560   :  { %2447 = vsyncpa [#allocation5 + $0x1], 1 }

</bundles_post_ra>
